<compile_context>
chip_gen: v7x
topology: tpu7x:2x2x1
jax: 0.10.0
libtpu: 0.0.40
codegen_flags: <defaults>
</compile_context>

<pallas_src>
import math

import jax
import jax.numpy as jnp
from jax.experimental import pallas as pl
from jax.experimental.pallas import tpu as pltpu

DIM = 2
EPS = 1e-12


def control_field_kernel(params_ref, r_ref, xs_ref, xaug_ref, u_ref, s_acc):
    # params (SMEM): [inv_h2, D, inv_sig2, eps_den, mu_x, mu_y, c_scale]
    inv_h2 = params_ref[0]
    D = params_ref[1]
    inv_sig2 = params_ref[2]
    eps_den = params_ref[3]          # EPS * N / norm_c  (rescaled guard)
    mu_x = params_ref[4]
    mu_y = params_ref[5]
    c = params_ref[6]                # 1 / (sqrt(2) * h)

    k = pl.program_id(1)

    @pl.when(k == 0)
    def _():
        s_acc[...] = jnp.zeros_like(s_acc)

    r = r_ref[...]                   # [TM, 2] query tile (resident across k)
    r0 = r[:, 0:1]
    r1 = r[:, 1:2]

    # Direct squared-distance form (pure VPU; no MXU round trip, no
    # ||r||^2+||x||^2-2r.x cancellation).  xs_ref holds a chunk of X.T
    # pre-scaled by c in the wrapper (loop-invariant work hoisted).
    d0 = r0 * c - xs_ref[0:1, :]                       # [TM, TN]
    d1 = r1 * c - xs_ref[1:2, :]                       # [TM, TN]
    e = jnp.exp(-(d0 * d0 + d1 * d1))                  # unnormalized weights

    # Single MXU pass per chunk: e @ [x0, x1, 1] -> partial
    # [sum e*x0, sum e*x1, sum e], accumulated in VMEM scratch across chunks.
    s_acc[...] += jnp.dot(e, xaug_ref[...], preferred_element_type=jnp.float32)

    @pl.when(k == pl.num_programs(1) - 1)
    def _():
        s = s_acc[...]                                 # [TM, 3]
        e_sum = s[:, 2:3]                              # [TM, 1]

        inv_den = inv_h2 / (e_sum + eps_den)           # [TM, 1]

        # score_hat = grad f_hat / f_hat  (norm_c and 1/N cancel exactly)
        sh0 = (s[:, 0:1] - e_sum * r0) * inv_den
        sh1 = (s[:, 1:2] - e_sum * r1) * inv_den

        # u = -D * (score_hat - score_d),  score_d = -(r - mu) / sigma_d^2
        # Direct slice stores (no concatenate / lane interleave).
        u_ref[:, 0:1] = (-D * (sh0 + (r0 - mu_x) * inv_sig2)).astype(u_ref.dtype)
        u_ref[:, 1:2] = (-D * (sh1 + (r1 - mu_y) * inv_sig2)).astype(u_ref.dtype)


def _vmem_capacity_bytes():
    try:
        return int(pltpu.get_tpu_info().vmem_capacity_bytes)
    except Exception:
        return 64 << 20   # conservative: v7x per-TC physical VMEM


def _select_tiles(M, N, slab_budget_bytes):
    """Pick (tile_m, tile_n) so the [tile_m, tile_n] f32 slab stays in budget."""
    # Particle-chunk tile: largest divisor of N that is a multiple of 128 and
    # <= 2048; a single chunk when N is small or not lane-aligned.
    TN_CAP = 2048
    if N <= TN_CAP or N % 128 != 0:
        tile_n = N
    else:
        tile_n = 128
        tn = 128
        while tn <= TN_CAP:
            if N % tn == 0:
                tile_n = tn
            tn += 128

    # Query tile: largest divisor of M (multiple of 8) keeping the weight
    # slab within budget; full M when it already fits / M not 8-aligned.
    cap_tm = max(8, slab_budget_bytes // (4 * tile_n))
    tile_m = M
    if M % 8 == 0 and M > cap_tm:
        tile_m = 8
        tm = 8
        while tm <= cap_tm:
            if M % tm == 0:
                tile_m = tm
            tm += 8

    # Megacore split of the query axis only when per-step work dwarfs the
    # ~0.35us step overhead: keeps 1-TC v5e/v6e at a single step for small
    # problems, feeds both v7x TensorCores for large ones.
    if tile_m == M and M % 16 == 0 and (M // 2) * N >= (1 << 18):
        tile_m = M // 2
    return tile_m, tile_n


def control_field(t, r, X, *, h, D, sigma_d, mu0, vel, tile_m=None, tile_n=None):
    """u(t, r, X): [M, DIM] control field evaluated at query points r."""
    M, dim = r.shape
    N, _ = X.shape
    assert dim == DIM

    # Generation-aware VMEM budget (v7x: 64 MiB physical per TC; v5e/v6e: 128).
    vmem_cap = _vmem_capacity_bytes()
    vmem_limit = int(min(max(vmem_cap // 2, 32 << 20), vmem_cap - (8 << 20)))
    slab_budget = vmem_limit // 4          # [TM, TN] f32 slab ~1/4 of scoped

    auto_tm, auto_tn = _select_tiles(M, N, slab_budget)
    if tile_m is None:
        tile_m = auto_tm
    if tile_n is None:
        tile_n = auto_tn
    assert M % tile_m == 0 and N % tile_n == 0

    r = r.astype(jnp.float32)
    X = X.astype(jnp.float32)
    mu_t = (mu0 + t * vel).astype(jnp.float32)

    inv_h2 = 1.0 / (h * h)
    norm_c = 1.0 / (2.0 * math.pi * h * h)      # (2*pi*h^2)^(-dim/2), dim=2
    eps_den = EPS * N / norm_c                  # rescaled EPS guard
    c_scale = 1.0 / (math.sqrt(2.0) * h)
    params = jnp.array(
        [inv_h2, D, 1.0 / (sigma_d * sigma_d), eps_den,
         mu_t[0], mu_t[1], c_scale], dtype=jnp.float32)

    # Loop-invariant particle tensors, precomputed once in the wrapper.
    xs = X.T * c_scale                                         # [DIM, N]
    x_aug = jnp.concatenate(
        [X, jnp.ones((N, 1), jnp.float32)], axis=1)            # [N, DIM+1]

    grid = (M // tile_m, N // tile_n)   # query axis parallel, particle axis
    return pl.pallas_call(              # (reduction) last / arbitrary.
        control_field_kernel,
        out_shape=jax.ShapeDtypeStruct((M, DIM), jnp.float32),
        grid_spec=pltpu.PrefetchScalarGridSpec(
            num_scalar_prefetch=0,
            grid=grid,
            in_specs=[
                pl.BlockSpec(memory_space=pltpu.MemorySpace.SMEM),     # params
                pl.BlockSpec((tile_m, DIM), lambda i, k: (i, 0)),      # r tile
                pl.BlockSpec((DIM, tile_n), lambda i, k: (0, k)),      # scaled X.T chunk
                pl.BlockSpec((tile_n, DIM + 1), lambda i, k: (k, 0)),  # [X, 1] chunk
            ],
            out_specs=pl.BlockSpec((tile_m, DIM), lambda i, k: (i, 0)),
            scratch_shapes=[pltpu.VMEM((tile_m, DIM + 1), jnp.float32)],
        ),
        compiler_params=pltpu.CompilerParams(
            dimension_semantics=("parallel", "arbitrary"),
            vmem_limit_bytes=vmem_limit),
    )(params, r, xs, x_aug)


def control_field_reference(t, r, X, *, h, D, sigma_d, mu0, vel):
    mu_t = mu0 + t * vel
    diff = r[:, None, :] - X[None, :, :]                  # [M,N,DIM]
    sq = jnp.sum(diff * diff, axis=-1)                    # [M,N]
    w = jnp.exp(-0.5 * sq / (h * h)) / (2.0 * jnp.pi * h * h)
    f_hat = jnp.mean(w, axis=-1, keepdims=True)           # [M,1]
    grad = -jnp.mean(w[..., None] * diff, axis=1) / (h * h)
    score_hat = grad / (f_hat + EPS)
    score_d = -(r - mu_t[None, :]) / (sigma_d * sigma_d)
    return -D * (score_hat - score_d)


if __name__ == "__main__":
    key = jax.random.PRNGKey(0)
    k_r, k_x = jax.random.split(key)

    M, N = 128, 256                       # query points, particles
    t = 0.5
    h, D, sigma_d = 0.3, 0.1, 1.0
    mu0 = jnp.array([0.25, -0.5], dtype=jnp.float32)
    vel = jnp.array([1.0, 0.5], dtype=jnp.float32)

    r = jax.random.normal(k_r, (M, DIM), dtype=jnp.float32)
    X = jax.random.normal(k_x, (N, DIM), dtype=jnp.float32) * 0.8

    u_ref = control_field_reference(t, r, X, h=h, D=D, sigma_d=sigma_d,
                                    mu0=mu0, vel=vel)

    # Auto tiling (single step at this small size: grid=(1,1)).
    u = control_field(t, r, X, h=h, D=D, sigma_d=sigma_d, mu0=mu0, vel=vel)
    u = jax.block_until_ready(u)
    assert u.shape == (M, DIM)
    assert jnp.allclose(u, u_ref, rtol=1e-4, atol=1e-5), (
        float(jnp.max(jnp.abs(u - u_ref))))

    # Exercise the chunked-N / multi-step path (forced small tiles) to verify
    # the VMEM accumulator init/finalize logic used at production sizes.
    u2 = control_field(t, r, X, h=h, D=D, sigma_d=sigma_d, mu0=mu0, vel=vel,
                       tile_m=64, tile_n=128)
    u2 = jax.block_until_ready(u2)
    assert jnp.allclose(u2, u_ref, rtol=1e-4, atol=1e-5), (
        float(jnp.max(jnp.abs(u2 - u_ref))))

    print("KERNEL_OK")
</pallas_src>

<mosaic_0001>
module attributes {stable_mosaic.version = 11 : i64} {
  func.func @control_field_kernel(%arg0: i32, %arg1: i32, %arg2: memref<7xf32, #tpu.memory_space<smem>>, %arg3: memref<128x2xf32, #tpu.memory_space<vmem>>, %arg4: memref<2x256xf32, #tpu.memory_space<vmem>>, %arg5: memref<256x3xf32, #tpu.memory_space<vmem>>, %arg6: memref<128x2xf32, #tpu.memory_space<vmem>>, %arg7: memref<128x3xf32, #tpu.memory_space<vmem>>) attributes {dimension_semantics = [#tpu.dimension_semantics<parallel>, #tpu.dimension_semantics<arbitrary>], iteration_bounds = array<i64: 1, 1>, scalar_prefetch = 0 : i64, scratch_operands = 1 : i64, tpu.core_type = #tpu.core_type<tc>, window_params = [{transform_indices = @transform_0, window_bounds = array<i64: 7>}, {transform_indices = @transform_1, window_bounds = array<i64: 128, 2>}, {transform_indices = @transform_2, window_bounds = array<i64: 2, 256>}, {transform_indices = @transform_3, window_bounds = array<i64: 256, 3>}, {transform_indices = @transform_4, window_bounds = array<i64: 128, 2>}]} {
    %c0 = arith.constant 0 : index
    %0 = memref.load %arg2[%c0] : memref<7xf32, #tpu.memory_space<smem>>
    %c1 = arith.constant 1 : index
    %1 = memref.load %arg2[%c1] : memref<7xf32, #tpu.memory_space<smem>>
    %c2 = arith.constant 2 : index
    %2 = memref.load %arg2[%c2] : memref<7xf32, #tpu.memory_space<smem>>
    %c3 = arith.constant 3 : index
    %3 = memref.load %arg2[%c3] : memref<7xf32, #tpu.memory_space<smem>>
    %c4 = arith.constant 4 : index
    %4 = memref.load %arg2[%c4] : memref<7xf32, #tpu.memory_space<smem>>
    %c5 = arith.constant 5 : index
    %5 = memref.load %arg2[%c5] : memref<7xf32, #tpu.memory_space<smem>>
    %c6 = arith.constant 6 : index
    %6 = memref.load %arg2[%c6] : memref<7xf32, #tpu.memory_space<smem>>
    %c0_i32 = arith.constant 0 : i32
    %7 = arith.cmpi eq, %arg1, %c0_i32 : i32
    %8 = arith.extui %7 : i1 to i32
    %c0_i32_0 = arith.constant 0 : i32
    %9 = arith.cmpi ne, %8, %c0_i32_0 : i32
    scf.if %9 {
      %cst_16 = arith.constant 0.000000e+00 : f32
      %39 = vector.broadcast %cst_16 : f32 to vector<128x3xf32>
      %c0_17 = arith.constant 0 : index
      %c0_18 = arith.constant 0 : index
      %40 = vector.load %arg7[%c0_17, %c0_18] : memref<128x3xf32, #tpu.memory_space<vmem>>, vector<128x3xf32>
      tpu.vector_store %arg7[%c0_17, %c0_18], %39 {strides = array<i32>} : memref<128x3xf32, #tpu.memory_space<vmem>>, vector<128x3xf32>,
    } else {
    }
    %c0_1 = arith.constant 0 : index
    %c0_2 = arith.constant 0 : index
    %10 = vector.load %arg3[%c0_1, %c0_2] : memref<128x2xf32, #tpu.memory_space<vmem>>, vector<128x2xf32>
    %11 = vector.extract_strided_slice %10 {offsets = [0, 0], sizes = [128, 1], strides = [1, 1]} : vector<128x2xf32> to vector<128x1xf32>
    %12 = vector.extract_strided_slice %10 {offsets = [0, 1], sizes = [128, 1], strides = [1, 1]} : vector<128x2xf32> to vector<128x1xf32>
    %13 = vector.broadcast %6 : f32 to vector<128x1xf32>
    %14 = arith.mulf %11, %13 : vector<128x1xf32>
    %c0_3 = arith.constant 0 : index
    %c0_4 = arith.constant 0 : index
    %15 = vector.load %arg4[%c0_3, %c0_4] : memref<2x256xf32, #tpu.memory_space<vmem>>, vector<1x256xf32>
    %16 = vector.broadcast %14 : vector<128x1xf32> to vector<128x256xf32>
    %17 = vector.broadcast %15 : vector<1x256xf32> to vector<128x256xf32>
    %18 = arith.subf %16, %17 : vector<128x256xf32>
    %19 = vector.broadcast %6 : f32 to vector<128x1xf32>
    %20 = arith.mulf %12, %19 : vector<128x1xf32>
    %c1_5 = arith.constant 1 : index
    %c0_6 = arith.constant 0 : index
    %21 = vector.load %arg4[%c1_5, %c0_6] : memref<2x256xf32, #tpu.memory_space<vmem>>, vector<1x256xf32>
    %22 = vector.broadcast %20 : vector<128x1xf32> to vector<128x256xf32>
    %23 = vector.broadcast %21 : vector<1x256xf32> to vector<128x256xf32>
    %24 = arith.subf %22, %23 : vector<128x256xf32>
    %25 = arith.mulf %18, %18 : vector<128x256xf32>
    %26 = arith.mulf %24, %24 : vector<128x256xf32>
    %27 = arith.addf %25, %26 : vector<128x256xf32>
    %cst = arith.constant 0.000000e+00 : f32
    %28 = vector.broadcast %cst : f32 to vector<128x256xf32>
    %29 = arith.subf %28, %27 : vector<128x256xf32>
    %30 = math.exp %29 : vector<128x256xf32>
    %c0_7 = arith.constant 0 : index
    %c0_8 = arith.constant 0 : index
    %31 = vector.load %arg7[%c0_7, %c0_8] : memref<128x3xf32, #tpu.memory_space<vmem>>, vector<128x3xf32>
    %c0_9 = arith.constant 0 : index
    %c0_10 = arith.constant 0 : index
    %32 = vector.load %arg5[%c0_9, %c0_10] : memref<256x3xf32, #tpu.memory_space<vmem>>, vector<256x3xf32>
    %cst_11 = arith.constant dense<0.000000e+00> : vector<128x3xf32>
    %33 = tpu.matmul %30, %32, %cst_11 {dimension_numbers = #tpu.dot_dimension_numbers<[1], [0], [0], [1], [0, 0, 1, 1], [], []>} : vector<128x256xf32>, vector<256x3xf32>, vector<128x3xf32> -> vector<128x3xf32>
    %34 = arith.addf %31, %33 : vector<128x3xf32>
    %c0_12 = arith.constant 0 : index
    %c0_13 = arith.constant 0 : index
    %35 = vector.load %arg7[%c0_12, %c0_13] : memref<128x3xf32, #tpu.memory_space<vmem>>, vector<128x3xf32>
    tpu.vector_store %arg7[%c0_12, %c0_13], %34 {strides = array<i32>} : memref<128x3xf32, #tpu.memory_space<vmem>>, vector<128x3xf32>,
    %c0_i32_14 = arith.constant 0 : i32
    %36 = arith.cmpi eq, %arg1, %c0_i32_14 : i32
    %37 = arith.extui %36 : i1 to i32
    %c0_i32_15 = arith.constant 0 : i32
    %38 = arith.cmpi ne, %37, %c0_i32_15 : i32
    scf.if %38 {
      %c0_16 = arith.constant 0 : index
      %c0_17 = arith.constant 0 : index
      %39 = vector.load %arg7[%c0_16, %c0_17] : memref<128x3xf32, #tpu.memory_space<vmem>>, vector<128x3xf32>
      %40 = vector.extract_strided_slice %39 {offsets = [0, 2], sizes = [128, 1], strides = [1, 1]} : vector<128x3xf32> to vector<128x1xf32>
      %41 = vector.broadcast %3 : f32 to vector<128x1xf32>
      %42 = arith.addf %40, %41 : vector<128x1xf32>
      %43 = vector.broadcast %0 : f32 to vector<128x1xf32>
      %44 = arith.divf %43, %42 : vector<128x1xf32>
      %45 = vector.extract_strided_slice %39 {offsets = [0, 0], sizes = [128, 1], strides = [1, 1]} : vector<128x3xf32> to vector<128x1xf32>
      %46 = arith.mulf %40, %11 : vector<128x1xf32>
      %47 = arith.subf %45, %46 : vector<128x1xf32>
      %48 = arith.mulf %47, %44 : vector<128x1xf32>
      %49 = vector.extract_strided_slice %39 {offsets = [0, 1], sizes = [128, 1], strides = [1, 1]} : vector<128x3xf32> to vector<128x1xf32>
      %50 = arith.mulf %40, %12 : vector<128x1xf32>
      %51 = arith.subf %49, %50 : vector<128x1xf32>
      %52 = arith.mulf %51, %44 : vector<128x1xf32>
      %cst_18 = arith.constant 0.000000e+00 : f32
      %53 = arith.subf %cst_18, %1 : f32
      %54 = vector.broadcast %4 : f32 to vector<128x1xf32>
      %55 = arith.subf %11, %54 : vector<128x1xf32>
      %56 = vector.broadcast %2 : f32 to vector<128x1xf32>
      %57 = arith.mulf %55, %56 : vector<128x1xf32>
      %58 = arith.addf %48, %57 : vector<128x1xf32>
      %59 = vector.broadcast %53 : f32 to vector<128x1xf32>
      %60 = arith.mulf %59, %58 : vector<128x1xf32>
      %c0_19 = arith.constant 0 : index
      %c0_20 = arith.constant 0 : index
      %61 = vector.load %arg6[%c0_19, %c0_20] : memref<128x2xf32, #tpu.memory_space<vmem>>, vector<128x1xf32>
      tpu.vector_store %arg6[%c0_19, %c0_20], %60 {strides = array<i32>} : memref<128x2xf32, #tpu.memory_space<vmem>>, vector<128x1xf32>,
      %cst_21 = arith.constant 0.000000e+00 : f32
      %62 = arith.subf %cst_21, %1 : f32
      %63 = vector.broadcast %5 : f32 to vector<128x1xf32>
      %64 = arith.subf %12, %63 : vector<128x1xf32>
      %65 = vector.broadcast %2 : f32 to vector<128x1xf32>
      %66 = arith.mulf %64, %65 : vector<128x1xf32>
      %67 = arith.addf %52, %66 : vector<128x1xf32>
      %68 = vector.broadcast %62 : f32 to vector<128x1xf32>
      %69 = arith.mulf %68, %67 : vector<128x1xf32>
      %c0_22 = arith.constant 0 : index
      %c1_23 = arith.constant 1 : index
      %70 = vector.load %arg6[%c0_22, %c1_23] : memref<128x2xf32, #tpu.memory_space<vmem>>, vector<128x1xf32>
      tpu.vector_store %arg6[%c0_22, %c1_23], %69 {strides = array<i32>} : memref<128x2xf32, #tpu.memory_space<vmem>>, vector<128x1xf32>,
    } else {
    }
    return
  }
  func.func @transform_0(%arg0: i32, %arg1: i32) -> i32 {
    %c0_i32 = arith.constant 0 : i32
    %c0_i32_0 = arith.constant 0 : i32
    return %c0_i32 : i32
  }
  func.func @transform_1(%arg0: i32, %arg1: i32) -> (i32, i32) {
    %c0_i32 = arith.constant 0 : i32
    %c0_i32_0 = arith.constant 0 : i32
    return %arg0, %c0_i32 : i32, i32
  }
  func.func @transform_2(%arg0: i32, %arg1: i32) -> (i32, i32) {
    %c0_i32 = arith.constant 0 : i32
    %c0_i32_0 = arith.constant 0 : i32
    return %c0_i32, %arg1 : i32, i32
  }
  func.func @transform_3(%arg0: i32, %arg1: i32) -> (i32, i32) {
    %c0_i32 = arith.constant 0 : i32
    %c0_i32_0 = arith.constant 0 : i32
    return %arg1, %c0_i32 : i32, i32
  }
  func.func @transform_4(%arg0: i32, %arg1: i32) -> (i32, i32) {
    %c0_i32 = arith.constant 0 : i32
    %c0_i32_0 = arith.constant 0 : i32
    return %arg0, %c0_i32 : i32, i32
  }
}

</mosaic_0001>

<bundles_post_ra>
// kernel: tpu_custom_call.1
= control target key start
LH: loop header
LB: loop body
LE: loop exit
PB: predicated region body
PF: predicated region fallthrough
CT: control target
= control target key end

     0   :  { %9 = vsyncpa [#allocation4], 0  ;;  %s2835_s0 = inlined_call_operand.vmem [shape: f32[7], index: 0, kind: input, shape index: {}]   ;;  %s2836_s1 = inlined_call_operand.vmem [shape: f32[128,2], index: 1, kind: input, shape index: {}]   ;;  %s2837_s2 = inlined_call_operand.vmem [shape: f32[2,256], index: 2, kind: input, shape index: {}]   ;;  %s2838_s3 = inlined_call_operand.vmem [shape: f32[256,3], index: 3, kind: input, shape index: {}]   ;;  %s2839_s4 = inlined_call_operand.vmem [shape: f32[128,2], index: 4, kind: output, shape index: {}]  }
   0x1   :  { %s16_s17 = sshll.u32 %s2835_s0, 4  ;;  %s17_s17 = int_to_ptr.vmem [resolvable:$true] %s16_s17 }
   0x2   :  { %s1704_s18 = scalar_lea.vmem %s17_s17, 16  ;;  %p1709_p1 = scmp.lt.s32.totalorder %s17_s17, %s17_s17 }
   0x3   :  { %p1705_p0 = scmp.ne.s32.totalorder %s17_s17, %s1704_s18  ;;  %p1710_p2 = scmp.lt.s32.totalorder %s1704_s18, %s1704_s18 }
   0x5   :  { %p1711_p3 = por %p1710_p2, %p1709_p1 }
   0x7   :  { %p1712_p4 = pnand %p1711_p3, %p1705_p0 }
   0x9   :  { %1715 = shalt.err (!%p1712_p4)
}
   0xa   :  { %s1718_s19 = smov [#allocation3]  }
   0xb   :  { %19 = dma.vmem_to_smem %s17_s17, 16, %s1718_s19, [#allocation4]  }
   0xc   :  { %1716 = dma.done.wait [#allocation4], 16  }
   0xd   :  { %1717 = vsyncadd [#allocation4], 4294967280 }
   0xe   :  { %29 = sfence }
   0xf   :  { %s1436_s20 = sld [smem:[#allocation3 + $0x6]]  ;;  %v1719_v0 = vmov 1   ;;  %v1759_v1 = vld [vmem:[%s2836_s1 + $0x8] sm:$0xff]  ;;  %v1764_v2 = vld [vmem:[%s2836_s1] sm:$0xff]  ;;  %v1771_v4 = vld [vmem:[%s2836_s1 + $0x18] sm:$0xff]  ;;  %v1720_v26 = vmov 0  }
  0x10   :  { %1576 = vset.pattern.permute.xlu0 %v1719_v0  ;;  %1574 = vset.pattern.permute.xlu1 %v1719_v0  ;;  %v1776_v5 = vld [vmem:[%s2836_s1 + $0x40] sm:$0xff]  ;;  %v549_v11 = vld [vmem:[%s2838_s3 + $0x88] sm:$0xff]  ;;  %v550_v19 = vld [vmem:[%s2838_s3 + $0x90] sm:$0xff]  ;;  %s1721_s8 = smov 2   ;;  %s1722_s9 = smov 1   ;;  %vm41_vm0 = vcmask 23552  }
  0x11   :  { %v548_v10 = vld [vmem:[%s2838_s3 + $0x80] sm:$0xff]  ;;  %v1800_v12 = vld [vmem:[%s2836_s1 + $0x28] sm:$0xff]  ;;  %v551_v20 = vld [vmem:[%s2838_s3 + $0x98] sm:$0xff]  ;;  %s1725_s14 = smov 126   ;;  %s1433_s15 = sld [smem:[#allocation3 + $0x3]]  ;;  %vm1327_vm1 = vcmask 7168  }
  0x12   :  { %v532_v13 = vld [vmem:[%s2838_s3] sm:$0xff]  ;;  %v533_v14 = vld [vmem:[%s2838_s3 + $0x8] sm:$0xff]  ;;  %v1518_v16 = vpack.c.bf16 %v549_v11, %v548_v10  ;;  %v1522_v22 = vpack.c.bf16 %v551_v20, %v550_v19  ;;  %v534_v23 = vld [vmem:[%s2838_s3 + $0x10] sm:$0xff]  ;;  %s30_s16 = sld [smem:[#allocation3]]  ;;  %s1434_s17 = sld [smem:[#allocation3 + $0x4]]  ;;  %vm1409_vm2 = vcmask 15368  }
  0x13   :  { %v1811_v15 = vld [vmem:[%s2836_s1 + $0x48] sm:$0xff]  ;;  %v1520_v17 = vpack.c.bf16 %v533_v14, %v532_v13  ;;  %v535_v24 = vld [vmem:[%s2838_s3 + $0x18] sm:$0xff]  ;;  %v552_v27 = vld [vmem:[%s2838_s3 + $0xa0] sm:$0xff]  ;;  %s1432_s18 = sld [smem:[#allocation3 + $0x2]]  ;;  %s1431_s19 = sld [smem:[#allocation3 + $0x1]] }
  0x14   :  { %1519 = vmatprep.subr.bf16.mxu0 %v1518_v16  ;;  %1550 = vmatprep.subr.bf16.mxu1 %v1518_v16  ;;  %v1524_v25 = vpack.c.bf16 %v535_v24, %v534_v23  ;;  %v553_v28 = vld [vmem:[%s2838_s3 + $0xa8] sm:$0xff]  ;;  %v536_v30 = vld [vmem:[%s2838_s3 + $0x20] sm:$0xff]  ;;  %v1850_v33 = vld [vmem:[%s2836_s1 + $0x10] sm:$0xff] }
  0x15   :  { %v1766_v3 = vstv %s1436_s20  ;;  %1521 = vmatpush3.bf16.msra.mxu0 %v1520_v17  ;;  %1558 = vmatpush3.bf16.msra.mxu1 %v1520_v17  ;;  %v1526_v29 = vpack.c.bf16 %v553_v28, %v552_v27  ;;  %v537_v31 = vld [vmem:[%s2838_s3 + $0x28] sm:$0xff]  ;;  %v554_v34 = vld [vmem:[%s2838_s3 + $0xb0] sm:$0xff]  ;;  %v555_v35 = vld [vmem:[%s2838_s3 + $0xb8] sm:$0xff]  ;;  %s1435_s20 = sld [smem:[#allocation3 + $0x5]] }
  0x16   :  { %v1780_v6 = vmul.f32 %v1766_v3, %v1759_v1  ;;  %v75_v7 = vmul.f32 %v1766_v3, %v1764_v2  ;;  %v1787_v8 = vmul.f32 %v1766_v3, %v1771_v4  ;;  %v83_v9 = vmul.f32 %v1766_v3, %v1776_v5  ;;  %1523 = vmatprep.subr.bf16.mxu0 %v1522_v22  ;;  %v538_v37 = vld [vmem:[%s2838_s3 + $0x30] sm:$0xff]  ;;  %v539_v38 = vld [vmem:[%s2838_s3 + $0x38] sm:$0xff]  ;;  %v556_v41 = vld [vmem:[%s2838_s3 + $0xc0] sm:$0xff] }
  0x17   :  { %v1816_v18 = vmul.f32 %v1766_v3, %v1800_v12  ;;  %v84_v21 = vmul.f32 %v1766_v3, %v1811_v15  ;;  %1551 = vmatprep.subr.bf16.mxu1 %v1522_v22  ;;  %v1528_v32 = vpack.c.bf16 %v537_v31, %v536_v30  ;;  %v1530_v36 = vpack.c.bf16 %v555_v35, %v554_v34  ;;  %v557_v42 = vld [vmem:[%s2838_s3 + $0xc8] sm:$0xff]  ;;  %v1877_v43 = vld [vmem:[%s2836_s1 + $0x50] sm:$0xff]  ;;  %v540_v45 = vld [vmem:[%s2838_s3 + $0x40] sm:$0xff] }
  0x18   :  { %222 = vperm.xlu0 %1576, %v1780_v6   ;;  %218 = vperm.xlu1 %1574, %v75_v7   ;;  %v77_v39 = vmul.f32 %v1766_v3, %v1850_v33  ;;  %v1532_v40 = vpack.c.bf16 %v539_v38, %v538_v37  ;;  %v1534_v44 = vpack.c.bf16 %v557_v42, %v556_v41  ;;  %v541_v46 = vld [vmem:[%s2838_s3 + $0x48] sm:$0xff]  ;;  %v558_v49 = vld [vmem:[%s2838_s3 + $0xd0] sm:$0xff]  ;;  %v559_v50 = vld [vmem:[%s2838_s3 + $0xd8] sm:$0xff] }
  0x19   :  { %1525 = vmatpush3.bf16.msra.mxu0 %v1524_v25  ;;  %1559 = vmatpush3.bf16.msra.mxu1 %v1524_v25  ;;  %v1536_v47 = vpack.c.bf16 %v541_v46, %v540_v45  ;;  %v85_v48 = vmul.f32 %v1766_v3, %v1877_v43  ;;  %v1538_v51 = vpack.c.bf16 %v559_v50, %v558_v49  ;;  %v542_v52 = vld [vmem:[%s2838_s3 + $0x50] sm:$0xff]  ;;  %v543_v53 = vld [vmem:[%s2838_s3 + $0x58] sm:$0xff]  ;;  %v560_v55 = vld [vmem:[%s2838_s3 + $0xe0] sm:$0xff]  ;;  %s1259_s22 = ssub.f32 0.0, %s1431_s19 }
  0x1a   :  { %1527 = vmatprep.subr.bf16.mxu0 %v1526_v29  ;;  %1552 = vmatprep.subr.bf16.mxu1 %v1526_v29  ;;  %v1540_v54 = vpack.c.bf16 %v543_v53, %v542_v52  ;;  %v561_v56 = vld [vmem:[%s2838_s3 + $0xe8] sm:$0xff]  ;;  %v1910_v57 = vld [vmem:[%s2836_s1 + $0x60] sm:$0xff]  ;;  %v1915_v58 = vld [vmem:[%s2836_s1 + $0x58] sm:$0xff] }
  0x1b   :  { %v1542_v59 = vpack.c.bf16 %v561_v56, %v560_v55  ;;  %v544_v60 = vld [vmem:[%s2838_s3 + $0x60] sm:$0xff]  ;;  %v545_v61 = vld [vmem:[%s2838_s3 + $0x68] sm:$0xff]  ;;  %v87_v63 = vmul.f32 %v1766_v3, %v1910_v57  ;;  %v546_v10 = vld [vmem:[%s2838_s3 + $0x70] sm:$0xff] }
  0x1c   :  { %230 = vperm.xlu0 %1576, %v1787_v8   ;;  %250 = vperm.xlu1 %1574, %v83_v9   ;;  %v1544_v62 = vpack.c.bf16 %v545_v61, %v544_v60  ;;  %v547_v11 = vld [vmem:[%s2838_s3 + $0x78] sm:$0xff]  ;;  %v1944_v14 = vld [vmem:[%s2836_s1 + $0x70] sm:$0xff]  ;;  %v1949_v16 = vld [vmem:[%s2836_s1 + $0x20] sm:$0xff] }
  0x1d   :  { %1529 = vmatpush3.bf16.msra.mxu0 %v1528_v32  ;;  %1560 = vmatpush3.bf16.msra.mxu1 %v1528_v32  ;;  %v1548_v13 = vpack.c.bf16 %v547_v11, %v546_v10  ;;  %v89_v17 = vmul.f32 %v1766_v3, %v1944_v14  ;;  %v1958_v19 = vld [vmem:[%s2836_s1 + $0x38] sm:$0xff]  ;;  %v79_v20 = vmul.f32 %v1766_v3, %v1949_v16  ;;  %v1978_v23 = vld [vmem:[%s2836_s1 + $0x30] sm:$0xff]  ;;  %v1437_v32 = vld [vmem:[%s2837_s2 + $0x1] ss:$2 sm:$0x3] }
  0x1e   :  { %1531 = vmatprep.subr.bf16.mxu0 %v1530_v36  ;;  %1553 = vmatprep.subr.bf16.mxu1 %v1530_v36  ;;  %v81_v24 = vmul.f32 %v1766_v3, %v1978_v23  ;;  %v1988_v25 = vld [vmem:[%s2836_s1 + $0x78] sm:$0xff]  ;;  %v91_v36 = vld [vmem:[%s2837_s2] ss:$2 sm:$0x3]  ;;  %s1724_s2 = smov 127  }
  0x1f   :  { %v90_v27 = vmul.f32 %v1766_v3, %v1988_v25 }
  0x20   :  { %238 = vperm.xlu0 %1576, %v1816_v18   ;;  %1575 = vset.pattern.permute.xlu1 %v1720_v26 }
  0x21   :  { %139 = vperm.xlu1 %1575, %v84_v21   ;;  %1533 = vmatpush3.bf16.msra.mxu0 %v1532_v40 }
  0x22   :  { %1561 = vmatpush3.bf16.msra.mxu1 %v1532_v40  ;;  %1535 = vmatprep.subr.bf16.mxu0 %v1534_v44 }
  0x23   :  { %1554 = vmatprep.subr.bf16.mxu1 %v1534_v44 }
  0x24   :  { %1585 = vset.pattern.permute.xlu0 %v1720_v26 }
  0x25   :  { %94 = vperm.xlu0 %1585, %v75_v7   ;;  %1577 = vset.pattern.permute.xlu1 %v1719_v0  ;;  %v562_v7 = vld [vmem:[%s2838_s3 + $0xf0] sm:$0xff] }
  0x26   :  { %254 = vperm.xlu1 %1577, %v84_v21   ;;  %1537 = vmatpush3.bf16.msra.mxu0 %v1536_v47  ;;  %v82_v21 = vmul.f32 %v1766_v3, %v1958_v19 }
  0x27   :  { %1562 = vmatpush3.bf16.msra.mxu1 %v1536_v47  ;;  %1539 = vmatprep.subr.bf16.mxu0 %v1538_v51 }
  0x28   :  { %1555 = vmatprep.subr.bf16.mxu1 %v1538_v51 }
  0x29   :  { %134 = vperm.xlu0 %1585, %v83_v9   ;;  %v563_v9 = vld [vmem:[%s2838_s3 + $0xf8] sm:$0xff] }
  0x2a   :  { %1578 = vset.pattern.permute.xlu1 %v1720_v26  ;;  %1541 = vmatpush3.bf16.msra.mxu0 %v1540_v54 }
  0x2b   :  { %104 = vperm.xlu1 %1578, %v77_v39   ;;  %1563 = vmatpush3.bf16.msra.mxu1 %v1540_v54 }
  0x2c   :  { %1543 = vmatprep.subr.bf16.mxu0 %v1542_v59  ;;  %1556 = vmatprep.subr.bf16.mxu1 %v1542_v59 }
  0x2d   :  { %99 = vperm.xlu0 %1585, %v1780_v6   ;;  %v86_v6 = vmul.f32 %v1766_v3, %v1915_v58 }
  0x2e   :  { %1545 = vmatpush3.bf16.msra.mxu0 %v1544_v62 }
  0x2f   :  { %1579 = vset.pattern.permute.xlu1 %v1719_v0  ;;  %1564 = vmatpush3.bf16.msra.mxu1 %v1544_v62 }
  0x30   :  { %226 = vperm.xlu1 %1579, %v77_v39  }
  0x31   :  { %144 = vperm.xlu0 %1585, %v85_v48  }
  0x34   :  { %258 = vperm.xlu1 %1579, %v85_v48  }
  0x35   :  { %109 = vperm.xlu0 %1585, %v1787_v8   ;;  %v1546_v8 = vpack.c.bf16 %v563_v9, %v562_v7 }
  0x37   :  { %1547 = vmatprep.subr.bf16.mxu0 %v1546_v8  ;;  %1557 = vmatprep.subr.bf16.mxu1 %v1546_v8 }
  0x38   :  { %1580 = vset.pattern.permute.xlu1 %v1720_v26  ;;  %1549 = vmatpush3.bf16.msra.mxu0 %v1548_v13 }
  0x39   :  { %154 = vperm.xlu0 %1585, %v87_v63   ;;  %149 = vperm.xlu1 %1580, %v86_v6  }
  0x3a   :  { %1565 = vmatpush3.bf16.msra.mxu1 %v1548_v13 }
  0x3d   :  { %119 = vperm.xlu0 %1585, %v1816_v18   ;;  %1581 = vset.pattern.permute.xlu1 %v1719_v0  ;;  %v1970_v18 = vld [vmem:[%s2836_s1 + $0x68] sm:$0xff] }
  0x3e   :  { %262 = vperm.xlu1 %1581, %v86_v6   ;;  %v88_v22 = vmul.f32 %v1766_v3, %v1970_v18 }
  0x41   :  { %164 = vperm.xlu0 %1585, %v89_v17  }
  0x42   :  { %1582 = vset.pattern.permute.xlu1 %v1720_v26 }
  0x43   :  { %114 = vperm.xlu1 %1582, %v79_v20  }
  0x45   :  { %129 = vperm.xlu0 %1585, %v82_v21  }
  0x47   :  { %1583 = vset.pattern.permute.xlu1 %v1719_v0 }
  0x48   :  { %234 = vperm.xlu1 %1583, %v79_v20  }
  0x49   :  { %1590 = vset.pattern.permute.xlu0 %v1719_v0 }
  0x4a   :  { %246 = vperm.xlu0 %1590, %v82_v21  }
  0x4c   :  { %266 = vperm.xlu1 %1583, %v87_v63  }
  0x4e   :  { %829 = vrot.lane.b32.xlu0 %v1759_v1, %s1721_s8 }
  0x50   :  { %1584 = vset.pattern.permute.xlu1 %v1720_v26 }
  0x51   :  { %159 = vperm.xlu1 %1584, %v88_v22  }
  0x52   :  { %833 = vrot.lane.b32.xlu0 %v1771_v4, %s1721_s8 }
  0x55   :  { %1586 = vset.pattern.permute.xlu1 %v1719_v0 }
  0x56   :  { %270 = vperm.xlu1 %1586, %v88_v22   ;;  %837 = vrot.lane.b32.xlu0 %v1800_v12, %s1721_s8 }
  0x5a   :  { %1587 = vset.pattern.permute.xlu1 %v1720_v26  ;;  %841 = vrot.lane.b32.xlu0 %v1958_v19, %s1721_s8 }
  0x5b   :  { %124 = vperm.xlu1 %1587, %v81_v24  }
  0x5e   :  { %845 = vrot.lane.b32.xlu0 %v1811_v15, %s1721_s8 }
  0x5f   :  { %1588 = vset.pattern.permute.xlu1 %v1719_v0 }
  0x60   :  { %242 = vperm.xlu1 %1588, %v81_v24  }
  0x62   :  { %849 = vrot.lane.b32.xlu0 %v1915_v58, %s1721_s8 }
  0x64   :  { %274 = vperm.xlu1 %1588, %v89_v17  }
  0x66   :  { %853 = vrot.lane.b32.xlu0 %v1970_v18, %s1721_s8 }
  0x68   :  { %1589 = vset.pattern.permute.xlu1 %v1720_v26 }
  0x69   :  { %169 = vperm.xlu1 %1589, %v90_v27  }
  0x6a   :  { %857 = vrot.lane.b32.xlu0 %v1988_v25, %s1721_s8 }
  0x6d   :  { %1591 = vset.pattern.permute.xlu1 %v1719_v0  ;;  %v173_v0 = vlaneseq }
  0x6e   :  { %278 = vperm.xlu1 %1591, %v90_v27   ;;  %1051 = vrot.lane.b32.xlu0 %v1764_v2, %s1722_s9 }
  0x6f   :  { %v174_v28 = vshrl.u32 %v173_v0, 7 }
  0x71   :  { %v175_v31 = vsub.s32 0, %v174_v28  ;;  %v179_v35 = vsub.s32 1, %v174_v28 }
  0x72   :  { %827 = vrot.lane.b32.xlu1 %v1764_v2, %s1721_s8  ;;  %1055 = vrot.lane.b32.xlu0 %v1850_v33, %s1722_s9 }
  0x73   :  { %v2028_v2 = vrot.slane %v91_v36, %v175_v31  ;;  %v2030_v38 = vrot.slane %v1437_v32, %v179_v35  ;;  %v2034_v40 = vrot.slane %v91_v36, %v179_v35 }
  0x76   :  { %831 = vrot.lane.b32.xlu1 %v1850_v33, %s1721_s8  ;;  %1059 = vrot.lane.b32.xlu0 %v1949_v16, %s1722_s9 }
  0x7a   :  { %835 = vrot.lane.b32.xlu1 %v1949_v16, %s1721_s8  ;;  %1063 = vrot.lane.b32.xlu0 %v1978_v23, %s1722_s9 }
  0x7e   :  { %839 = vrot.lane.b32.xlu1 %v1978_v23, %s1721_s8  ;;  %1067 = vrot.lane.b32.xlu0 %v1776_v5, %s1722_s9 }
  0x82   :  { %843 = vrot.lane.b32.xlu1 %v1776_v5, %s1721_s8  ;;  %1071 = vrot.lane.b32.xlu0 %v1877_v43, %s1722_s9 }
  0x86   :  { %847 = vrot.lane.b32.xlu1 %v1877_v43, %s1721_s8  ;;  %1075 = vrot.lane.b32.xlu0 %v1910_v57, %s1722_s9 }
  0x8a   :  { %851 = vrot.lane.b32.xlu1 %v1910_v57, %s1721_s8  ;;  %1079 = vrot.lane.b32.xlu0 %v1944_v14, %s1722_s9 }
  0x8e   :  { %855 = vrot.lane.b32.xlu1 %v1944_v14, %s1721_s8 }
  0x92   :  { %1053 = vrot.lane.b32.xlu1 %v1759_v1, %s1722_s9  ;;  %v2026_v1 = vrot.slane %v1437_v32, %v175_v31 }
  0x96   :  { %1057 = vrot.lane.b32.xlu1 %v1771_v4, %s1722_s9 }
  0x97   :  { %v223_v3 = vpop.permute.xlu0 %222  ;;  %v219_v26 = vpop.permute.xlu1 %218 }
  0x98   :  { %v292_v4 = vsub.f32 %v219_v26, %v2026_v1  ;;  %v293_v47 = vsub.f32 %v219_v26, %v2030_v38  ;;  %v294_v53 = vsub.f32 %v223_v3, %v2026_v1  ;;  %v295_v54 = vsub.f32 %v223_v3, %v2030_v38 }
  0x9a   :  { %1061 = vrot.lane.b32.xlu1 %v1800_v12, %s1722_s9  ;;  %v356_v55 = vmul.f32 %v292_v4, %v292_v4  ;;  %v357_v63 = vmul.f32 %v293_v47, %v293_v47  ;;  %v359_v17 = vmul.f32 %v295_v54, %v295_v54 }
  0x9b   :  { %v231_v29 = vpop.permute.xlu0 %230  ;;  %v251_v30 = vpop.permute.xlu1 %250 }
  0x9c   :  { %v308_v50 = vsub.f32 %v251_v30, %v2026_v1  ;;  %v298_v6 = vsub.f32 %v231_v29, %v2026_v1  ;;  %v299_v7 = vsub.f32 %v231_v29, %v2030_v38  ;;  %v358_v29 = vmul.f32 %v294_v53, %v294_v53 }
  0x9e   :  { %1065 = vrot.lane.b32.xlu1 %v1958_v19, %s1722_s9  ;;  %v372_v10 = vmul.f32 %v308_v50, %v308_v50  ;;  %v309_v19 = vsub.f32 %v251_v30, %v2030_v38  ;;  %v362_v30 = vmul.f32 %v298_v6, %v298_v6  ;;  %v363_v31 = vmul.f32 %v299_v7, %v299_v7 }
  0x9f   :  { %v2017_v34 = vpop.permute.xlu0 %238 }
  0xa0   :  { %v140_v37 = vpop.permute.xlu1 %139  ;;  %v373_v35 = vmul.f32 %v309_v19, %v309_v19 }
  0xa1   :  { %v201_v44 = vsub.f32 %v140_v37, %v2028_v2  ;;  %v202_v12 = vsub.f32 %v140_v37, %v2034_v40 }
  0xa2   :  { %1069 = vrot.lane.b32.xlu1 %v1811_v15, %s1722_s9 }
  0xa3   :  { %v342_v59 = vmul.f32 %v201_v44, %v201_v44  ;;  %v343_v11 = vmul.f32 %v202_v12, %v202_v12 }
  0xa4   :  { %v95_v39 = vpop.permute.xlu0 %94 }
  0xa5   :  { %v183_v41 = vsub.f32 %v95_v39, %v2028_v2  ;;  %v255_v42 = vpop.permute.xlu1 %254  ;;  %v184_v45 = vsub.f32 %v95_v39, %v2034_v40 }
  0xa6   :  { %v310_v33 = vsub.f32 %v255_v42, %v2026_v1  ;;  %v311_v46 = vsub.f32 %v255_v42, %v2030_v38  ;;  %1073 = vrot.lane.b32.xlu1 %v1915_v58, %s1722_s9 }
  0xa7   :  { %v324_v48 = vmul.f32 %v183_v41, %v183_v41  ;;  %v325_v60 = vmul.f32 %v184_v45, %v184_v45 }
  0xa8   :  { %v135_v49 = vpop.permute.xlu0 %134  ;;  %v374_v51 = vmul.f32 %v310_v33, %v310_v33  ;;  %v375_v61 = vmul.f32 %v311_v46, %v311_v46 }
  0xa9   :  { %v199_v52 = vsub.f32 %v135_v49, %v2028_v2  ;;  %v388_v9 = vadd.f32 %v356_v55, %v324_v48  ;;  %v200_v20 = vsub.f32 %v135_v49, %v2034_v40  ;;  %v389_v27 = vadd.f32 %v357_v63, %v325_v60 }
  0xaa   :  { %v105_v56 = vpop.permute.xlu1 %104  ;;  %v406_v13 = vadd.f32 %v374_v51, %v342_v59  ;;  %v2064_v22 = vadd.f32 %v375_v61, %v343_v11  ;;  %1077 = vrot.lane.b32.xlu1 %v1970_v18, %s1722_s9 }
  0xab   :  { %v340_v62 = vmul.f32 %v199_v52, %v199_v52  ;;  %v420_v0 = vsub.f32 0.0, %v388_v9  ;;  %v188_v3 = vsub.f32 %v105_v56, %v2034_v40  ;;  %v341_v41 = vmul.f32 %v200_v20, %v200_v20 }
  0xac   :  { %v100_v8 = vpop.permute.xlu0 %99  ;;  %v438_v32 = vsub.f32 0.0, %v406_v13  ;;  %v187_v4 = vsub.f32 %v105_v56, %v2028_v2  ;;  %v439_v43 = vsub.f32 0.0, %v2064_v22  ;;  %v421_v48 = vsub.f32 0.0, %v389_v27 }
  0xad   :  { %v185_v16 = vsub.f32 %v100_v8, %v2028_v2  ;;  %v186_v21 = vsub.f32 %v100_v8, %v2034_v40  ;;  %v404_v23 = vadd.f32 %v372_v10, %v340_v62  ;;  %v452_v45 = vmul.f32 1.442695, %v420_v0 }
  0xae   :  { %v329_v46 = vmul.f32 %v188_v3, %v188_v3  ;;  %v488_v58 = vmul.f32 1.442695, %v438_v32  ;;  %v328_v56 = vmul.f32 %v187_v4, %v187_v4  ;;  %v454_v9 = vmul.f32 1.442695, %v421_v48  ;;  %1081 = vrot.lane.b32.xlu1 %v1988_v25, %s1722_s9 }
  0xaf   :  { %v326_v24 = vmul.f32 %v185_v16, %v185_v16  ;;  %v227_v5 = vpop.permute.xlu1 %226  ;;  %v327_v26 = vmul.f32 %v186_v21, %v186_v21  ;;  %v436_v42 = vsub.f32 0.0, %v404_v23  ;;  %1592 = vpow2.f32 %v452_v45 }
  0xb0   :  { %v297_v28 = vsub.f32 %v227_v5, %v2030_v38  ;;  %v145_v15 = vpop.permute.xlu0 %144  ;;  %v296_v37 = vsub.f32 %v227_v5, %v2026_v1  ;;  %1594 = vpow2.f32 %v488_v58  ;;  %v405_v14 = vadd.f32 %v373_v35, %v341_v41 }
  0xb1   :  { %v391_v36 = vadd.f32 %v359_v17, %v327_v26  ;;  %v390_v33 = vadd.f32 %v358_v29, %v326_v24  ;;  %v204_v53 = vsub.f32 %v145_v15, %v2034_v40  ;;  %v484_v55 = vmul.f32 1.442695, %v436_v42 }
  0xb2   :  { %v361_v39 = vmul.f32 %v297_v28, %v297_v28  ;;  %v360_v51 = vmul.f32 %v296_v37, %v296_v37  ;;  %v203_v7 = vsub.f32 %v145_v15, %v2028_v2  ;;  %v490_v22 = vmul.f32 1.442695, %v439_v43 }
  0xb3   :  { %v259_v44 = vpop.permute.xlu1 %258  ;;  %v423_v49 = vsub.f32 0.0, %v391_v36  ;;  %v422_v59 = vsub.f32 0.0, %v390_v33  ;;  %v345_v11 = vmul.f32 %v204_v53, %v204_v53  ;;  %1596 = vpow2.f32 %v484_v55 }
  0xb4   :  { %v110_v47 = vpop.permute.xlu0 %109  ;;  %v313_v50 = vsub.f32 %v259_v44, %v2030_v38  ;;  %v393_v52 = vadd.f32 %v361_v39, %v329_v46  ;;  %v312_v57 = vsub.f32 %v259_v44, %v2026_v1  ;;  %v392_v8 = vadd.f32 %v360_v51, %v328_v56 }
  0xb5   :  { %v189_v12 = vsub.f32 %v110_v47, %v2028_v2  ;;  %v190_v54 = vsub.f32 %v110_v47, %v2034_v40  ;;  %v458_v18 = vmul.f32 1.442695, %v423_v49  ;;  %v456_v16 = vmul.f32 1.442695, %v422_v59 }
  0xb6   :  { %v377_v60 = vmul.f32 %v313_v50, %v313_v50  ;;  %v425_v10 = vsub.f32 0.0, %v393_v52  ;;  %v376_v17 = vmul.f32 %v312_v57, %v312_v57  ;;  %v344_v23 = vmul.f32 %v203_v7, %v203_v7 }
  0xb7   :  { %v330_v61 = vmul.f32 %v189_v12, %v189_v12  ;;  %v331_v62 = vmul.f32 %v190_v54, %v190_v54  ;;  %1598 = vpow2.f32 %v458_v18  ;;  %v424_v27 = vsub.f32 0.0, %v392_v8 }
  0xb8   :  { %v2084_v63 = vpop.permute.xlu0 %154  ;;  %v150_v6 = vpop.permute.xlu1 %149  ;;  %v409_v19 = vadd.f32 %v377_v60, %v345_v11  ;;  %v462_v25 = vmul.f32 1.442695, %v425_v10  ;;  %1600 = vpow2.f32 %v454_v9  ;;  %v408_v26 = vadd.f32 %v376_v17, %v344_v23 }
  0xb9   :  { %v395_v13 = vadd.f32 %v363_v31, %v331_v62  ;;  %v394_v20 = vadd.f32 %v362_v30, %v330_v61  ;;  %v205_v21 = vsub.f32 %v150_v6, %v2028_v2  ;;  %v206_v24 = vsub.f32 %v150_v6, %v2034_v40  ;;  %v1593_v41 = vpop.eup %1592 }
  0xba   :  { %1602 = vpow2.f32 %v456_v16  ;;  %v441_v29 = vsub.f32 0.0, %v409_v19  ;;  %v437_v32 = vsub.f32 0.0, %v405_v14  ;;  %v303_v42 = vsub.f32 %v2017_v34, %v2030_v38  ;;  %v2098_v45 = vpop.eup %1594 }
  0xbb   :  { %v427_v0 = vsub.f32 0.0, %v395_v13  ;;  %v426_v30 = vsub.f32 0.0, %v394_v20  ;;  %v346_v31 = vmul.f32 %v205_v21, %v205_v21  ;;  %v347_v35 = vmul.f32 %v206_v24, %v206_v24 }
  0xbc   :  { %v120_v3 = vpop.permute.xlu0 %119  ;;  %1604 = vpow2.f32 %v462_v25  ;;  %v486_v33 = vmul.f32 1.442695, %v437_v32  ;;  %v460_v43 = vmul.f32 1.442695, %v424_v27  ;;  %v440_v46 = vsub.f32 0.0, %v408_v26 }
  0xbd   :  { %v263_v5 = vpop.permute.xlu1 %262  ;;  %v194_v36 = vsub.f32 %v120_v3, %v2034_v40  ;;  %v466_v4 = vmul.f32 1.442695, %v427_v0  ;;  %v302_v58 = vsub.f32 %v2017_v34, %v2026_v1  ;;  %v494_v49 = vmul.f32 1.442695, %v441_v29  ;;  %v1597_v12 = vpop.eup %1596 }
  0xbe   :  { %v314_v28 = vsub.f32 %v263_v5, %v2026_v1  ;;  %v315_v15 = vsub.f32 %v263_v5, %v2030_v38  ;;  %v193_v50 = vsub.f32 %v120_v3, %v2028_v2  ;;  %1606 = vpow2.f32 %v486_v33 }
  0xbf   :  { %1608 = vpow2.f32 %v490_v22  ;;  %v464_v51 = vmul.f32 1.442695, %v426_v30  ;;  %v335_v52 = vmul.f32 %v194_v36, %v194_v36  ;;  %v367_v54 = vmul.f32 %v303_v42, %v303_v42 }
  0xc0   :  { %v378_v37 = vmul.f32 %v314_v28, %v314_v28  ;;  %v379_v39 = vmul.f32 %v315_v15, %v315_v15  ;;  %1610 = vpow2.f32 %v466_v4  ;;  %v492_v59 = vmul.f32 1.442695, %v440_v46  ;;  %v2111_v16 = vpop.permute.xlu0 %164 }
  0xc1   :  { %v1599_v56 = vpop.eup %1598  ;;  %1612 = vpow2.f32 %v460_v43  ;;  %v334_v62 = vmul.f32 %v193_v50, %v193_v50  ;;  %v366_v9 = vmul.f32 %v302_v58, %v302_v58  ;;  %v399_v8 = vadd.f32 %v367_v54, %v335_v52 }
  0xc2   :  { %v115_v44 = vpop.permute.xlu1 %114  ;;  %v410_v47 = vadd.f32 %v378_v37, %v346_v31  ;;  %v411_v48 = vadd.f32 %v379_v39, %v347_v35  ;;  %v1601_v61 = vpop.eup %1600  ;;  %1614 = vpow2.f32 %v494_v49  ;;  %v207_v11 = vsub.f32 %v2084_v63, %v2028_v2 }
  0xc3   :  { %v191_v55 = vsub.f32 %v115_v44, %v2028_v2  ;;  %v192_v60 = vsub.f32 %v115_v44, %v2034_v40  ;;  %1616 = vpow2.f32 %v464_v51  ;;  %628 = vmatprep.mubr.f32.mxu0 %v1601_v61  ;;  %v208_v13 = vsub.f32 %v2084_v63, %v2034_v40 }
  0xc4   :  { %v443_v53 = vsub.f32 0.0, %v411_v48  ;;  %v442_v57 = vsub.f32 0.0, %v410_v47  ;;  %v1603_v7 = vpop.eup %1602  ;;  %629 = vmatmul.mubr.f32.vlgmr.msra.gmra.mrb[0].mxu0 %v1593_v41  ;;  %1618 = vpow2.f32 %v492_v59  ;;  %v398_v24 = vadd.f32 %v366_v9, %v334_v62  ;;  %v130_v37 = vpop.permute.xlu0 %129 }
  0xc5   :  { %v332_v17 = vmul.f32 %v191_v55, %v191_v55  ;;  %633 = vmatprep.mubr.f32.mxu0 %v1599_v56  ;;  %v333_v21 = vmul.f32 %v192_v60, %v192_v60  ;;  %v431_v25 = vsub.f32 0.0, %v399_v8  ;;  %v348_v26 = vmul.f32 %v207_v11, %v207_v11 }
  0xc6   :  { %v498_v6 = vmul.f32 1.442695, %v443_v53  ;;  %v496_v20 = vmul.f32 1.442695, %v442_v57  ;;  %v1605_v23 = vpop.eup %1604  ;;  %v349_v30 = vmul.f32 %v208_v13, %v208_v13  ;;  %v430_v36 = vsub.f32 0.0, %v398_v24 }
  0xc7   :  { %v235_v34 = vpop.permute.xlu1 %234  ;;  %v474_v33 = vmul.f32 1.442695, %v431_v25  ;;  %v198_v8 = vsub.f32 %v130_v37, %v2034_v40 }
  0xc8   :  { %v300_v18 = vsub.f32 %v235_v34, %v2026_v1  ;;  %v301_v10 = vsub.f32 %v235_v34, %v2030_v38  ;;  %1620 = vpow2.f32 %v498_v6  ;;  %v1607_v3 = vpop.eup %1606  ;;  %634 = vmatmul.mubr.f32.gmra.mrb[2].mxu0 %v1603_v7 }
  0xc9   :  { %v1609_v29 = vpop.eup %1608  ;;  %1622 = vpow2.f32 %v496_v20  ;;  %668 = vmatprep.mubr.f32.mxu1 %v1607_v3  ;;  %638 = vmatprep.mubr.f32.mxu0 %v1605_v23  ;;  %v247_v59 = vpop.permute.xlu0 %246  ;;  %v339_v25 = vmul.f32 %v198_v8, %v198_v8 }
  0xca   :  { %v364_v19 = vmul.f32 %v300_v18, %v300_v18  ;;  %v365_v14 = vmul.f32 %v301_v10, %v301_v10  ;;  %v1611_v35 = vpop.eup %1610  ;;  %669 = vmatmul.mubr.f32.vlgmr.msra.gmra.mrb[0].mxu1 %v1597_v12  ;;  %v472_v12 = vmul.f32 1.442695, %v430_v36  ;;  %v307_v6 = vsub.f32 %v247_v59, %v2030_v38 }
  0xcb   :  { %v267_v22 = vpop.permute.xlu1 %266  ;;  %v1613_v4 = vpop.eup %1612  ;;  %673 = vmatprep.mubr.f32.mxu1 %v1609_v29  ;;  %v306_v10 = vsub.f32 %v247_v59, %v2026_v1 }
  0xcc   :  { %v396_v5 = vadd.f32 %v364_v19, %v332_v17  ;;  %v316_v27 = vsub.f32 %v267_v22, %v2026_v1  ;;  %v397_v0 = vadd.f32 %v365_v14, %v333_v21  ;;  %v317_v63 = vsub.f32 %v267_v22, %v2030_v38  ;;  %v1615_v47 = vpop.eup %1614  ;;  %639 = vmatmul.mubr.f32.gmra.mrb[4].mxu0 %v1613_v4 }
  0xcd   :  { %v1617_v49 = vpop.eup %1616  ;;  %643 = vmatprep.mubr.f32.mxu0 %v1611_v35  ;;  %v197_v14 = vsub.f32 %v130_v37, %v2028_v2  ;;  %v371_v22 = vmul.f32 %v307_v6, %v307_v6 }
  0xce   :  { %v428_v28 = vsub.f32 0.0, %v396_v5  ;;  %v380_v15 = vmul.f32 %v316_v27, %v316_v27  ;;  %v429_v31 = vsub.f32 0.0, %v397_v0  ;;  %v381_v32 = vmul.f32 %v317_v63, %v317_v63  ;;  %674 = vmatmul.mubr.f32.gmra.mrb[2].mxu1 %v2098_v45  ;;  %v1619_v52 = vpop.eup %1618 }
  0xcf   :  { %678 = vmatprep.mubr.f32.mxu1 %v1615_v47  ;;  %v211_v27 = vsub.f32 %v2111_v16, %v2028_v2  ;;  %v370_v0 = vmul.f32 %v306_v10, %v306_v10  ;;  %v403_v35 = vadd.f32 %v371_v22, %v339_v25 }
  0xd0   :  { %v468_v39 = vmul.f32 1.442695, %v428_v28  ;;  %v412_v41 = vadd.f32 %v380_v15, %v348_v26  ;;  %v160_v42 = vpop.permute.xlu1 %159  ;;  %v470_v44 = vmul.f32 1.442695, %v429_v31  ;;  %v413_v43 = vadd.f32 %v381_v32, %v349_v30  ;;  %644 = vmatmul.mubr.f32.gmra.mrb[6].mxu0 %v1617_v49 }
  0xd1   :  { %v209_v46 = vsub.f32 %v160_v42, %v2028_v2  ;;  %v210_v58 = vsub.f32 %v160_v42, %v2034_v40  ;;  %v212_v31 = vsub.f32 %v2111_v16, %v2034_v40  ;;  %v338_v32 = vmul.f32 %v197_v14, %v197_v14 }
  0xd2   :  { %1624 = vpow2.f32 %v468_v39  ;;  %v444_v48 = vsub.f32 0.0, %v412_v41  ;;  %v445_v50 = vsub.f32 0.0, %v413_v43  ;;  %v1621_v56 = vpop.eup %1620  ;;  %679 = vmatmul.mubr.f32.gmra.mrb[4].mxu1 %v1619_v52  ;;  %v435_v16 = vsub.f32 0.0, %v403_v35 }
  0xd3   :  { %1626 = vpow2.f32 %v470_v44  ;;  %v350_v54 = vmul.f32 %v209_v46, %v209_v46  ;;  %v351_v57 = vmul.f32 %v210_v58, %v210_v58  ;;  %v1623_v62 = vpop.eup %1622  ;;  %683 = vmatprep.mubr.f32.mxu1 %v1621_v56  ;;  %v402_v41 = vadd.f32 %v370_v0, %v338_v32 }
  0xd4   :  { %v500_v51 = vmul.f32 1.442695, %v444_v48  ;;  %1628 = vpow2.f32 %v474_v33  ;;  %v502_v53 = vmul.f32 1.442695, %v445_v50  ;;  %v352_v46 = vmul.f32 %v211_v27, %v211_v27 }
  0xd5   :  { %v271_v55 = vpop.permute.xlu1 %270  ;;  %v353_v47 = vmul.f32 %v212_v31, %v212_v31  ;;  %v482_v56 = vmul.f32 1.442695, %v435_v16  ;;  %v1723_v0 = vmov 0.0  }
  0xd6   :  { %1630 = vpow2.f32 %v500_v51  ;;  %v318_v60 = vsub.f32 %v271_v55, %v2026_v1  ;;  %v319_v34 = vsub.f32 %v271_v55, %v2030_v38  ;;  %684 = vmatmul.mubr.f32.gmra.mrb[6].mxu1 %v1623_v62  ;;  %42 = vst.msk [vmem:[#allocation2] sm:$0xff] %vm41_vm0, %v1723_v0  ;;  %43 = vst.msk [vmem:[#allocation2 + $0x8] sm:$0xff] %vm41_vm0, %v1723_v0 }
  0xd7   :  { %1632 = vpow2.f32 %v502_v53  ;;  %44 = vst.msk [vmem:[#allocation2 + $0x10] sm:$0xff] %vm41_vm0, %v1723_v0  ;;  %45 = vst.msk [vmem:[#allocation2 + $0x18] sm:$0xff] %vm41_vm0, %v1723_v0 }
  0xd8   :  { %1634 = vpow2.f32 %v472_v12  ;;  %v382_v45 = vmul.f32 %v318_v60, %v318_v60  ;;  %v383_v61 = vmul.f32 %v319_v34, %v319_v34  ;;  %v434_v12 = vsub.f32 0.0, %v402_v41  ;;  %46 = vst.msk [vmem:[#allocation2 + $0x20] sm:$0xff] %vm41_vm0, %v1723_v0  ;;  %47 = vst.msk [vmem:[#allocation2 + $0x28] sm:$0xff] %vm41_vm0, %v1723_v0 }
  0xd9   :  { %48 = vst.msk [vmem:[#allocation2 + $0x30] sm:$0xff] %vm41_vm0, %v1723_v0  ;;  %49 = vst.msk [vmem:[#allocation2 + $0x38] sm:$0xff] %vm41_vm0, %v1723_v0 }
  0xda   :  { %v414_v18 = vadd.f32 %v382_v45, %v350_v54  ;;  %v415_v7 = vadd.f32 %v383_v61, %v351_v57  ;;  %v125_v9 = vpop.permute.xlu1 %124  ;;  %v480_v62 = vmul.f32 1.442695, %v434_v12  ;;  %50 = vst.msk [vmem:[#allocation2 + $0x40] sm:$0xff] %vm41_vm0, %v1723_v0  ;;  %51 = vst.msk [vmem:[#allocation2 + $0x48] sm:$0xff] %vm41_vm0, %v1723_v0 }
  0xdb   :  { %v195_v11 = vsub.f32 %v125_v9, %v2028_v2  ;;  %v196_v20 = vsub.f32 %v125_v9, %v2034_v40  ;;  %52 = vst.msk [vmem:[#allocation2 + $0x50] sm:$0xff] %vm41_vm0, %v1723_v0  ;;  %53 = vst.msk [vmem:[#allocation2 + $0x58] sm:$0xff] %vm41_vm0, %v1723_v0 }
  0xdc   :  { %v1625_v13 = vpop.eup %1624  ;;  %v446_v17 = vsub.f32 0.0, %v414_v18  ;;  %v447_v19 = vsub.f32 0.0, %v415_v7  ;;  %54 = vst.msk [vmem:[#allocation2 + $0x60] sm:$0xff] %vm41_vm0, %v1723_v0  ;;  %55 = vst.msk [vmem:[#allocation2 + $0x68] sm:$0xff] %vm41_vm0, %v1723_v0 }
  0xdd   :  { %v1627_v21 = vpop.eup %1626  ;;  %v336_v63 = vmul.f32 %v195_v11, %v195_v11  ;;  %v337_v28 = vmul.f32 %v196_v20, %v196_v20  ;;  %56 = vst.msk [vmem:[#allocation2 + $0x70] sm:$0xff] %vm41_vm0, %v1723_v0  ;;  %57 = vst.msk [vmem:[#allocation2 + $0x78] sm:$0xff] %vm41_vm0, %v1723_v0  ;;  %v517_v12 = vld [vmem:[#allocation2 + $0x8] sm:$0xff] }
  0xde   :  { %v504_v23 = vmul.f32 1.442695, %v446_v17  ;;  %v506_v24 = vmul.f32 1.442695, %v447_v19  ;;  %648 = vmatprep.mubr.f32.mxu0 %v1627_v21  ;;  %v1629_v5 = vpop.eup %1628 }
  0xdf   :  { %649 = vmatmul.mubr.f32.gmra.mrb[8].mxu0 %v1625_v13  ;;  %v243_v3 = vpop.permute.xlu1 %242 }
  0xe0   :  { %v1631_v26 = vpop.eup %1630  ;;  %1636 = vpow2.f32 %v504_v23  ;;  %653 = vmatprep.mubr.f32.mxu0 %v1629_v5  ;;  %v304_v15 = vsub.f32 %v243_v3, %v2026_v1  ;;  %v305_v29 = vsub.f32 %v243_v3, %v2030_v38 }
  0xe1   :  { %v1633_v30 = vpop.eup %1632  ;;  %1638 = vpow2.f32 %v506_v24 }
  0xe2   :  { %v1635_v36 = vpop.eup %1634  ;;  %v368_v37 = vmul.f32 %v304_v15, %v304_v15  ;;  %v369_v39 = vmul.f32 %v305_v29, %v305_v29  ;;  %688 = vmatprep.mubr.f32.mxu1 %v1633_v30 }
  0xe3   :  { %654 = vmatmul.mubr.f32.gmra.mrb[10].mxu0 %v1635_v36  ;;  %689 = vmatmul.mubr.f32.gmra.mrb[8].mxu1 %v1631_v26  ;;  %v275_v42 = vpop.permute.xlu1 %274 }
  0xe4   :  { %v400_v4 = vadd.f32 %v368_v37, %v336_v63  ;;  %v401_v33 = vadd.f32 %v369_v39, %v337_v28  ;;  %v320_v44 = vsub.f32 %v275_v42, %v2026_v1  ;;  %v321_v43 = vsub.f32 %v275_v42, %v2030_v38  ;;  %v2154_v63 = vpop.permute.xlu0 %829 }
  0xe6   :  { %v432_v48 = vsub.f32 0.0, %v400_v4  ;;  %v433_v58 = vsub.f32 0.0, %v401_v33  ;;  %v384_v49 = vmul.f32 %v320_v44, %v320_v44  ;;  %v385_v50 = vmul.f32 %v321_v43, %v321_v43 }
  0xe8   :  { %v476_v51 = vmul.f32 1.442695, %v432_v48  ;;  %v478_v52 = vmul.f32 1.442695, %v433_v58  ;;  %v416_v53 = vadd.f32 %v384_v49, %v352_v46  ;;  %v417_v54 = vadd.f32 %v385_v50, %v353_v47  ;;  %v170_v55 = vpop.permute.xlu1 %169  ;;  %v2156_v3 = vpop.permute.xlu0 %833  ;;  %v516_v47 = vld [vmem:[#allocation2] sm:$0xff] }
  0xe9   :  { %v213_v59 = vsub.f32 %v170_v55, %v2028_v2  ;;  %v214_v45 = vsub.f32 %v170_v55, %v2034_v40  ;;  %v524_v55 = vld [vmem:[#allocation2 + $0x40] sm:$0xff] }
  0xea   :  { %v1637_v57 = vpop.eup %1636  ;;  %1640 = vpow2.f32 %v476_v51  ;;  %v448_v60 = vsub.f32 0.0, %v416_v53  ;;  %v449_v34 = vsub.f32 0.0, %v417_v54 }
  0xeb   :  { %v1639_v61 = vpop.eup %1638  ;;  %1642 = vpow2.f32 %v478_v52  ;;  %v354_v7 = vmul.f32 %v213_v59, %v213_v59  ;;  %v355_v8 = vmul.f32 %v214_v45, %v214_v45 }
  0xec   :  { %v508_v6 = vmul.f32 1.442695, %v448_v60  ;;  %v510_v18 = vmul.f32 1.442695, %v449_v34  ;;  %693 = vmatprep.mubr.f32.mxu1 %v1639_v61  ;;  %1644 = vpow2.f32 %v482_v56  ;;  %v2158_v28 = vpop.permute.xlu0 %837  ;;  %v518_v34 = vld [vmem:[#allocation2 + $0x10] sm:$0xff] }
  0xed   :  { %694 = vmatmul.mubr.f32.gmra.mrb[10].mxu1 %v1637_v57  ;;  %v279_v9 = vpop.permute.xlu1 %278 }
  0xee   :  { %1646 = vpow2.f32 %v508_v6  ;;  %v322_v2 = vsub.f32 %v279_v9, %v2026_v1  ;;  %v323_v10 = vsub.f32 %v279_v9, %v2030_v38 }
  0xef   :  { %1648 = vpow2.f32 %v510_v18  ;;  %v525_v18 = vld [vmem:[#allocation2 + $0x48] sm:$0xff] }
  0xf0   :  { %1650 = vpow2.f32 %v480_v62  ;;  %v386_v11 = vmul.f32 %v322_v2, %v322_v2  ;;  %v387_v40 = vmul.f32 %v323_v10, %v323_v10  ;;  %v2162_v29 = vpop.permute.xlu0 %841 }
  0xf1   :  { %v828_v26 = vpop.permute.xlu1 %827 }
  0xf2   :  { %v418_v13 = vadd.f32 %v386_v11, %v354_v7  ;;  %v419_v17 = vadd.f32 %v387_v40, %v355_v8 }
  0xf4   :  { %v1641_v19 = vpop.eup %1640  ;;  %v450_v20 = vsub.f32 0.0, %v418_v13  ;;  %v451_v21 = vsub.f32 0.0, %v419_v17  ;;  %v2166_v31 = vpop.permute.xlu0 %845  ;;  %v519_v13 = vld [vmem:[#allocation2 + $0x18] sm:$0xff] }
  0xf5   :  { %v1643_v14 = vpop.eup %1642  ;;  %v2160_v15 = vpop.permute.xlu1 %831 }
  0xf6   :  { %v512_v22 = vmul.f32 1.442695, %v450_v20  ;;  %v514_v23 = vmul.f32 1.442695, %v451_v21  ;;  %658 = vmatprep.mubr.f32.mxu0 %v1643_v14  ;;  %v1645_v24 = vpop.eup %1644 }
  0xf7   :  { %659 = vmatmul.mubr.f32.gmra.mrb[12].mxu0 %v1641_v19 }
  0xf8   :  { %v1647_v5 = vpop.eup %1646  ;;  %1652 = vpow2.f32 %v512_v22  ;;  %663 = vmatprep.mubr.f32.mxu0 %v1645_v24  ;;  %v2170_v35 = vpop.permute.xlu0 %849 }
  0xf9   :  { %v1649_v1 = vpop.eup %1648  ;;  %1654 = vpow2.f32 %v514_v23  ;;  %v2164_v30 = vpop.permute.xlu1 %835  ;;  %v526_v23 = vld [vmem:[#allocation2 + $0x50] sm:$0xff] }
  0xfa   :  { %v1651_v38 = vpop.eup %1650  ;;  %698 = vmatprep.mubr.f32.mxu1 %v1649_v1 }
  0xfb   :  { %664 = vmatmul.mubr.f32.gmra.mrb[14].mxu0 %v1651_v38  ;;  %699 = vmatmul.mubr.f32.gmra.mrb[12].mxu1 %v1647_v5 }
  0xfc   :  { %v2174_v37 = vpop.permute.xlu0 %853 }
  0xfd   :  { %v2168_v32 = vpop.permute.xlu1 %839 }
 0x100   :  { %v2178_v41 = vpop.permute.xlu0 %857 }
 0x101   :  { %v2172_v36 = vpop.permute.xlu1 %843 }
 0x102   :  { %v1653_v27 = vpop.eup %1652 }
 0x103   :  { %v1655_v25 = vpop.eup %1654 }
 0x104   :  { %703 = vmatprep.mubr.f32.mxu1 %v1655_v25  ;;  %v1052_v4 = vpop.permute.xlu0 %1051 }
 0x105   :  { %704 = vmatmul.mubr.f32.gmra.mrb[14].mxu1 %v1653_v27  ;;  %v2176_v39 = vpop.permute.xlu1 %847 }
 0x108   :  { %v2184_v44 = vpop.permute.xlu0 %1055 }
 0x109   :  { %v2180_v42 = vpop.permute.xlu1 %851 }
 0x10c   :  { %v2188_v50 = vpop.permute.xlu0 %1059 }
 0x10d   :  { %v2182_v33 = vpop.permute.xlu1 %855 }
 0x110   :  { %v2194_v9 = vpop.permute.xlu0 %1063 }
 0x111   :  { %v2186_v46 = vpop.permute.xlu1 %1053 }
 0x114   :  { %v1068_v38 = vpop.permute.xlu0 %1067 }
 0x115   :  { %v2191_v54 = vpop.permute.xlu1 %1057 }
 0x119   :  { %v2197_v10 = vpop.permute.xlu1 %1061 }
 0x11d   :  { %v2208_v25 = vpop.permute.xlu1 %1065 }
 0x197   :  { %v1470_v43 = vpop.f32.mrb[0].mxu0 }
 0x198   :  { %v1471_v16 = vpop.f32.mrb[1].mxu0 }
 0x199   :  { %v1472_v48 = vadd.f32 %v1471_v16, %v1470_v43  ;;  %v527_v43 = vld [vmem:[#allocation2 + $0x58] sm:$0xff] }
 0x19b   :  { %v709_v58 = vadd.f32 %v1472_v48, %v516_v47  ;;  %v1473_v49 = vpop.f32.mrb[2].mxu0 }
 0x19c   :  { %v1474_v51 = vpop.f32.mrb[3].mxu0 }
 0x19d   :  { %726 = vst.msk [vmem:[#allocation2] sm:$0xff] %vm41_vm0, %v709_v58  ;;  %v1494_v52 = vpop.f32.mrb[0].mxu1  ;;  %v1475_v53 = vadd.f32 %v1474_v51, %v1473_v49 }
 0x19e   :  { %v1495_v56 = vpop.f32.mrb[1].mxu1 }
 0x19f   :  { %v1496_v59 = vadd.f32 %v1495_v56, %v1494_v52  ;;  %v710_v57 = vadd.f32 %v1475_v53, %v517_v12  ;;  %v1476_v60 = vpop.f32.mrb[4].mxu0  ;;  %v520_v53 = vld [vmem:[#allocation2 + $0x20] sm:$0xff] }
 0x1a0   :  { %v1477_v45 = vpop.f32.mrb[5].mxu0 }
 0x1a1   :  { %v717_v61 = vadd.f32 %v1496_v59, %v524_v55  ;;  %v1497_v62 = vpop.f32.mrb[2].mxu1  ;;  %727 = vst.msk [vmem:[#allocation2 + $0x8] sm:$0xff] %vm41_vm0, %v710_v57  ;;  %v1478_v6 = vadd.f32 %v1477_v45, %v1476_v60  ;;  %v1070_v59 = vpop.permute.xlu1 %1069 }
 0x1a2   :  { %v1498_v7 = vpop.f32.mrb[3].mxu1 }
 0x1a3   :  { %734 = vst.msk [vmem:[#allocation2 + $0x40] sm:$0xff] %vm41_vm0, %v717_v61  ;;  %v1499_v8 = vadd.f32 %v1498_v7, %v1497_v62  ;;  %v711_v2 = vadd.f32 %v1478_v6, %v518_v34  ;;  %v1479_v11 = vpop.f32.mrb[6].mxu0  ;;  %v528_v61 = vld [vmem:[#allocation2 + $0x60] sm:$0xff] }
 0x1a4   :  { %v2199_v40 = vld [vmem:[#allocation2] sm:$0xff]  ;;  %v1480_v17 = vpop.f32.mrb[7].mxu0 }
 0x1a5   :  { %v718_v19 = vadd.f32 %v1499_v8, %v525_v18  ;;  %728 = vst.msk [vmem:[#allocation2 + $0x10] sm:$0xff] %vm41_vm0, %v711_v2  ;;  %v1500_v20 = vpop.f32.mrb[4].mxu1  ;;  %v1099_v21 = vmul.f32 %v1052_v4, %v2199_v40  ;;  %v875_v14 = vmul.f32 %v828_v26, %v2199_v40  ;;  %v1481_v22 = vadd.f32 %v1480_v17, %v1479_v11 }
 0x1a6   :  { %v1501_v24 = vpop.f32.mrb[5].mxu1  ;;  %v2230_v18 = vstv %s1433_s15 }
 0x1a7   :  { %735 = vst.msk [vmem:[#allocation2 + $0x48] sm:$0xff] %vm41_vm0, %v718_v19  ;;  %1131 = vrot.lane.b32.xlu0 %v1099_v21, %s1724_s2  ;;  %v1502_v5 = vadd.f32 %v1501_v24, %v1500_v20  ;;  %907 = vrot.lane.b32.xlu1 %v875_v14, %s1725_s14  ;;  %v712_v1 = vadd.f32 %v1481_v22, %v519_v13  ;;  %v1072_v20 = vpop.permute.xlu0 %1071 }
 0x1a8   :  { %v2212_v4 = vld [vmem:[#allocation2 + $0x8] sm:$0xff]  ;;  %v762_v17 = vadd.f32 %v2230_v18, %v2199_v40 }
 0x1a9   :  { %v719_v27 = vadd.f32 %v1502_v5, %v526_v23  ;;  %729 = vst.msk [vmem:[#allocation2 + $0x18] sm:$0xff] %vm41_vm0, %v712_v1  ;;  %v1503_v0 = vpop.f32.mrb[6].mxu1  ;;  %v876_v12 = vmul.f32 %v2154_v63, %v2212_v4  ;;  %v1100_v51 = vmul.f32 %v2186_v46, %v2212_v4  ;;  %v521_v63 = vld [vmem:[#allocation2 + $0x28] sm:$0xff] }
 0x1aa   :  { %v2210_v26 = vld [vmem:[#allocation2 + $0x40] sm:$0xff]  ;;  %v1504_v47 = vpop.f32.mrb[7].mxu1  ;;  %1656 = vrcp.f32 %v762_v17  ;;  %v529_v5 = vld [vmem:[#allocation2 + $0x68] sm:$0xff] }
 0x1ab   :  { %736 = vst.msk [vmem:[#allocation2 + $0x50] sm:$0xff] %vm41_vm0, %v719_v27  ;;  %v1107_v16 = vmul.f32 %v1068_v38, %v2210_v26  ;;  %v883_v48 = vmul.f32 %v2172_v36, %v2210_v26  ;;  %v1505_v58 = vadd.f32 %v1504_v47, %v1503_v0  ;;  %v770_v22 = vadd.f32 %v2230_v18, %v2210_v26 }
 0x1ac   :  { %v2235_v2 = vld [vmem:[#allocation2 + $0x10] sm:$0xff] }
 0x1ad   :  { %1147 = vrot.lane.b32.xlu0 %v1107_v16, %s1724_s2  ;;  %923 = vrot.lane.b32.xlu1 %v883_v48, %s1725_s14  ;;  %v720_v52 = vadd.f32 %v1505_v58, %v527_v43  ;;  %v1101_v19 = vmul.f32 %v2184_v44, %v2235_v2  ;;  %v763_v16 = vadd.f32 %v2230_v18, %v2212_v4 }
 0x1ae   :  { %v2225_v36 = vld [vmem:[#allocation2 + $0x48] sm:$0xff] }
 0x1af   :  { %737 = vst.msk [vmem:[#allocation2 + $0x58] sm:$0xff] %vm41_vm0, %v720_v52  ;;  %v1108_v7 = vmul.f32 %v1070_v59, %v2225_v36  ;;  %v884_v8 = vmul.f32 %v2166_v31, %v2225_v36  ;;  %v877_v31 = vmul.f32 %v2160_v15, %v2235_v2 }
 0x1b0   :  { %v2260_v38 = vld [vmem:[#allocation2 + $0x18] sm:$0xff] }
 0x1b1   :  { %909 = vrot.lane.b32.xlu0 %v876_v12, %s1725_s14  ;;  %1133 = vrot.lane.b32.xlu1 %v1100_v51, %s1724_s2  ;;  %v878_v48 = vmul.f32 %v2156_v3, %v2260_v38  ;;  %v1102_v58 = vmul.f32 %v2191_v54, %v2260_v38  ;;  %v1074_v51 = vpop.permute.xlu1 %1073  ;;  %v771_v3 = vadd.f32 %v2230_v18, %v2225_v36 }
 0x1b2   :  { %v1482_v49 = vpop.f32.mrb[8].mxu0  ;;  %v2247_v21 = vld [vmem:[#allocation2 + $0x50] sm:$0xff] }
 0x1b3   :  { %v1483_v55 = vpop.f32.mrb[9].mxu0  ;;  %v1109_v24 = vmul.f32 %v1072_v20, %v2247_v21  ;;  %v885_v15 = vmul.f32 %v2176_v39, %v2247_v21 }
 0x1b4   :  { %v1484_v56 = vadd.f32 %v1483_v55, %v1482_v49  ;;  %v2288_v55 = vstv %s30_s16 }
 0x1b5   :  { %925 = vrot.lane.b32.xlu0 %v884_v8, %s1725_s14  ;;  %1149 = vrot.lane.b32.xlu1 %v1108_v7, %s1724_s2 }
 0x1b6   :  { %v713_v57 = vadd.f32 %v1484_v56, %v520_v53  ;;  %v1485_v60 = vpop.f32.mrb[10].mxu0  ;;  %v1506_v34 = vpop.f32.mrb[8].mxu1  ;;  %v2278_v12 = vld [vmem:[#allocation2 + $0x58] sm:$0xff] }
 0x1b7   :  { %v1486_v45 = vpop.f32.mrb[11].mxu0  ;;  %v1507_v46 = vpop.f32.mrb[9].mxu1  ;;  %v1110_v54 = vmul.f32 %v1074_v51, %v2278_v12  ;;  %v886_v52 = vmul.f32 %v2170_v35, %v2278_v12 }
 0x1b8   :  { %730 = vst.msk [vmem:[#allocation2 + $0x20] sm:$0xff] %vm41_vm0, %v713_v57  ;;  %v1487_v62 = vadd.f32 %v1486_v45, %v1485_v60  ;;  %v1508_v6 = vadd.f32 %v1507_v46, %v1506_v34  ;;  %v1657_v53 = vpop.eup %1656  ;;  %v522_v57 = vld [vmem:[#allocation2 + $0x30] sm:$0xff] }
 0x1b9   :  { %1135 = vrot.lane.b32.xlu0 %v1101_v19, %s1724_s2  ;;  %911 = vrot.lane.b32.xlu1 %v877_v31, %s1725_s14  ;;  %v530_v19 = vld [vmem:[#allocation2 + $0x70] sm:$0xff] }
 0x1ba   :  { %v714_v11 = vadd.f32 %v1487_v62, %v521_v63  ;;  %v721_v13 = vadd.f32 %v1508_v6, %v528_v61  ;;  %v1076_v63 = vpop.permute.xlu0 %1075  ;;  %v780_v61 = vmul.f32 %v1657_v53, %v2288_v55 }
 0x1bc   :  { %731 = vst.msk [vmem:[#allocation2 + $0x28] sm:$0xff] %vm41_vm0, %v714_v11  ;;  %738 = vst.msk [vmem:[#allocation2 + $0x60] sm:$0xff] %vm41_vm0, %v721_v13  ;;  %v523_v13 = vld [vmem:[#allocation2 + $0x38] sm:$0xff] }
 0x1bd   :  { %1151 = vrot.lane.b32.xlu0 %v1109_v24, %s1724_s2  ;;  %927 = vrot.lane.b32.xlu1 %v885_v15, %s1725_s14 }
 0x1bf   :  { %v2251_v14 = vld [vmem:[#allocation2 + $0x20] sm:$0xff] }
 0x1c0   :  { %v1509_v23 = vpop.f32.mrb[10].mxu1  ;;  %v766_v44 = vadd.f32 %v2230_v18, %v2251_v14  ;;  %v1103_v59 = vmul.f32 %v2188_v50, %v2251_v14 }
 0x1c1   :  { %v1510_v1 = vpop.f32.mrb[11].mxu1  ;;  %913 = vrot.lane.b32.xlu0 %v878_v48, %s1725_s14  ;;  %1137 = vrot.lane.b32.xlu1 %v1102_v58, %s1724_s2 }
 0x1c2   :  { %v1511_v27 = vadd.f32 %v1510_v1, %v1509_v23  ;;  %1658 = vrcp.f32 %v766_v44 }
 0x1c3   :  { %v2264_v0 = vld [vmem:[#allocation2 + $0x60] sm:$0xff]  ;;  %v2266_v43 = vld [vmem:[#allocation2 + $0x28] sm:$0xff]  ;;  %1660 = vrcp.f32 %v770_v22 }
 0x1c4   :  { %v722_v47 = vadd.f32 %v1511_v27, %v529_v5  ;;  %v774_v39 = vadd.f32 %v2230_v18, %v2264_v0  ;;  %v767_v49 = vadd.f32 %v2230_v18, %v2266_v43  ;;  %v1111_v11 = vmul.f32 %v1076_v63, %v2264_v0 }
 0x1c5   :  { %929 = vrot.lane.b32.xlu0 %v886_v52, %s1725_s14  ;;  %1153 = vrot.lane.b32.xlu1 %v1110_v54, %s1724_s2 }
 0x1c6   :  { %739 = vst.msk [vmem:[#allocation2 + $0x68] sm:$0xff] %vm41_vm0, %v722_v47  ;;  %1662 = vrcp.f32 %v774_v39 }
 0x1c7   :  { %1664 = vrcp.f32 %v767_v49 }
 0x1c8   :  { %1666 = vrcp.f32 %v763_v16 }
 0x1c9   :  { %1668 = vrcp.f32 %v771_v3  ;;  %987 = vrot.lane.b32.xlu1 %v780_v61, %s1725_s14  ;;  %1139 = vrot.lane.b32.xlu0 %v1103_v59, %s1724_s2  ;;  %v531_v3 = vld [vmem:[#allocation2 + $0x78] sm:$0xff] }
 0x1ca   :  { %v1488_v56 = vpop.f32.mrb[12].mxu0 }
 0x1cb   :  { %v1489_v60 = vpop.f32.mrb[13].mxu0 }
 0x1cc   :  { %v1659_v34 = vpop.eup %1658  ;;  %v1490_v45 = vadd.f32 %v1489_v60, %v1488_v56  ;;  %v764_v60 = vadd.f32 %v2230_v18, %v2235_v2 }
 0x1cd   :  { %v2295_v35 = vld [vmem:[#allocation2 + $0x68] sm:$0xff]  ;;  %v2298_v46 = vmul.f32 %v1659_v34, %v2288_v55  ;;  %v1661_v62 = vpop.eup %1660  ;;  %1155 = vrot.lane.b32.xlu0 %v1111_v11, %s1724_s2 }
 0x1ce   :  { %v715_v6 = vadd.f32 %v1490_v45, %v522_v57  ;;  %v1491_v7 = vpop.f32.mrb[14].mxu0  ;;  %v1512_v8 = vpop.f32.mrb[12].mxu1  ;;  %v775_v50 = vadd.f32 %v2230_v18, %v2295_v35  ;;  %v796_v24 = vmul.f32 %v1661_v62, %v2288_v55  ;;  %v879_v45 = vmul.f32 %v2164_v30, %v2251_v14 }
 0x1cf   :  { %v1492_v17 = vpop.f32.mrb[15].mxu0  ;;  %v1513_v31 = vpop.f32.mrb[13].mxu1  ;;  %v772_v62 = vadd.f32 %v2230_v18, %v2247_v21  ;;  %v765_v30 = vadd.f32 %v2230_v18, %v2260_v38 }
 0x1d0   :  { %v1663_v20 = vpop.eup %1662  ;;  %732 = vst.msk [vmem:[#allocation2 + $0x30] sm:$0xff] %vm41_vm0, %v715_v6  ;;  %1670 = vrcp.f32 %v775_v50  ;;  %v1493_v22 = vadd.f32 %v1492_v17, %v1491_v7  ;;  %v1514_v23 = vadd.f32 %v1513_v31, %v1512_v8  ;;  %1003 = vrot.lane.b32.xlu1 %v796_v24, %s1725_s14  ;;  %v887_v6 = vmul.f32 %v2180_v42, %v2264_v0  ;;  %v1078_v42 = vpop.permute.xlu1 %1077 }
 0x1d1   :  { %v1665_v44 = vpop.eup %1664  ;;  %v2308_v15 = vmul.f32 %v1663_v20, %v2288_v55  ;;  %v1104_v8 = vmul.f32 %v2197_v10, %v2266_v43  ;;  %v880_v50 = vmul.f32 %v2158_v28, %v2266_v43  ;;  %v773_v10 = vadd.f32 %v2230_v18, %v2278_v12 }
 0x1d2   :  { %v1667_v5 = vpop.eup %1666  ;;  %v716_v1 = vadd.f32 %v1493_v22, %v523_v13  ;;  %v723_v27 = vadd.f32 %v1514_v23, %v530_v19  ;;  %v2311_v47 = vmul.f32 %v1665_v44, %v2288_v55  ;;  %v1112_v31 = vmul.f32 %v1078_v42, %v2295_v35 }
 0x1d3   :  { %v782_v39 = vmul.f32 %v1667_v5, %v2288_v55  ;;  %v1669_v16 = vpop.eup %1668  ;;  %v888_v20 = vmul.f32 %v2174_v37, %v2295_v35  ;;  %v2468_v42 = vstv %s1432_s18 }
 0x1d4   :  { %733 = vst.msk [vmem:[#allocation2 + $0x38] sm:$0xff] %vm41_vm0, %v716_v1  ;;  %740 = vst.msk [vmem:[#allocation2 + $0x70] sm:$0xff] %vm41_vm0, %v723_v27  ;;  %1195 = vrot.lane.b32.xlu1 %v780_v61, %s1724_s2  ;;  %v798_v51 = vmul.f32 %v1669_v16, %v2288_v55  ;;  %v1080_v1 = vpop.permute.xlu0 %1079 }
 0x1d5   :  { %989 = vrot.lane.b32.xlu0 %v782_v39, %s1725_s14 }
 0x1d7   :  { %v2320_v48 = vld [vmem:[#allocation2 + $0x30] sm:$0xff] }
 0x1d8   :  { %v1515_v58 = vpop.f32.mrb[14].mxu1  ;;  %v768_v49 = vadd.f32 %v2230_v18, %v2320_v48  ;;  %1211 = vrot.lane.b32.xlu1 %v796_v24, %s1724_s2 }
 0x1d9   :  { %v1516_v54 = vpop.f32.mrb[15].mxu1  ;;  %1005 = vrot.lane.b32.xlu0 %v798_v51, %s1725_s14 }
 0x1da   :  { %v1671_v52 = vpop.eup %1670  ;;  %v1517_v53 = vadd.f32 %v1516_v54, %v1515_v58  ;;  %1672 = vrcp.f32 %v768_v49 }
 0x1db   :  { %v2327_v56 = vld [vmem:[#allocation2 + $0x70] sm:$0xff]  ;;  %v2329_v59 = vld [vmem:[#allocation2 + $0x38] sm:$0xff]  ;;  %v2332_v57 = vmul.f32 %v1671_v52, %v2288_v55 }
 0x1dc   :  { %v724_v34 = vadd.f32 %v1517_v53, %v531_v3  ;;  %v776_v63 = vadd.f32 %v2230_v18, %v2327_v56  ;;  %v769_v61 = vadd.f32 %v2230_v18, %v2329_v59  ;;  %915 = vrot.lane.b32.xlu1 %v879_v45, %s1725_s14  ;;  %v1113_v27 = vmul.f32 %v1080_v1, %v2327_v56  ;;  %v1082_v53 = vpop.permute.xlu1 %1081 }
 0x1dd   :  { %1197 = vrot.lane.b32.xlu0 %v782_v39, %s1724_s2  ;;  %v881_v3 = vmul.f32 %v2168_v32, %v2320_v48  ;;  %v889_v54 = vmul.f32 %v2182_v33, %v2327_v56  ;;  %v882_v52 = vmul.f32 %v2162_v29, %v2329_v59 }
 0x1de   :  { %741 = vst.msk [vmem:[#allocation2 + $0x78] sm:$0xff] %vm41_vm0, %v724_v34  ;;  %1674 = vrcp.f32 %v776_v63 }
 0x1df   :  { %1676 = vrcp.f32 %v769_v61 }
 0x1e0   :  { %1678 = vrcp.f32 %v764_v60  ;;  %931 = vrot.lane.b32.xlu1 %v887_v6, %s1725_s14 }
 0x1e1   :  { %1213 = vrot.lane.b32.xlu0 %v798_v51, %s1724_s2  ;;  %1680 = vrcp.f32 %v772_v62 }
 0x1e2   :  { %1682 = vrcp.f32 %v765_v30  ;;  %v2458_v30 = vstv %s1434_s17 }
 0x1e4   :  { %v1673_v7 = vpop.eup %1672  ;;  %1141 = vrot.lane.b32.xlu1 %v1104_v8, %s1724_s2 }
 0x1e5   :  { %v2357_v11 = vld [vmem:[#allocation2 + $0x78] sm:$0xff]  ;;  %v2360_v13 = vmul.f32 %v1673_v7, %v2288_v55  ;;  %917 = vrot.lane.b32.xlu0 %v880_v50, %s1725_s14  ;;  %v1688_v7 = vld [vmem:[%s2836_s1] sm:$0xff] }
 0x1e6   :  { %v777_v17 = vadd.f32 %v2230_v18, %v2357_v11  ;;  %v1105_v18 = vmul.f32 %v2194_v9, %v2320_v48  ;;  %v1114_v32 = vmul.f32 %v1082_v53, %v2357_v11  ;;  %v890_v33 = vmul.f32 %v2178_v41, %v2357_v11 }
 0x1e7   :  { %v1261_v8 = vsub.f32 %v1688_v7, %v2458_v30 }
 0x1e8   :  { %v1675_v19 = vpop.eup %1674  ;;  %1684 = vrcp.f32 %v777_v17  ;;  %1157 = vrot.lane.b32.xlu1 %v1112_v31, %s1724_s2  ;;  %v2476_v31 = vstv %s1435_s20 }
 0x1e9   :  { %v1677_v28 = vpop.eup %1676  ;;  %v808_v22 = vmul.f32 %v1675_v19, %v2288_v55  ;;  %933 = vrot.lane.b32.xlu0 %v888_v20, %s1725_s14  ;;  %1686 = vrcp.f32 %v773_v10  ;;  %v1278_v19 = vmul.f32 %v2468_v42, %v1261_v8  ;;  %v1689_v10 = vld [vmem:[%s2836_s1 + $0x40] sm:$0xff] }
 0x1ea   :  { %v1679_v23 = vpop.eup %1678  ;;  %v794_v44 = vmul.f32 %v1677_v28, %v2288_v55  ;;  %v1269_v28 = vsub.f32 %v1689_v10, %v2458_v30 }
 0x1eb   :  { %v784_v24 = vmul.f32 %v1679_v23, %v2288_v55  ;;  %v1681_v5 = vpop.eup %1680 }
 0x1ec   :  { %v1683_v37 = vpop.eup %1682  ;;  %v800_v39 = vmul.f32 %v1681_v5, %v2288_v55  ;;  %v1286_v1 = vmul.f32 %v2468_v42, %v1269_v28 }
 0x1ed   :  { %991 = vrot.lane.b32.xlu1 %v784_v24, %s1725_s14  ;;  %1143 = vrot.lane.b32.xlu0 %v1105_v18, %s1724_s2  ;;  %v786_v9 = vmul.f32 %v1683_v37, %v2288_v55  ;;  %v1690_v37 = vld [vmem:[%s2836_s1 + $0x8] sm:$0xff] }
 0x1f1   :  { %1007 = vrot.lane.b32.xlu1 %v800_v39, %s1725_s14  ;;  %1159 = vrot.lane.b32.xlu0 %v1113_v27, %s1724_s2  ;;  %v1262_v27 = vsub.f32 %v1690_v37, %v2458_v30 }
 0x1f2   :  { %v1685_v16 = vpop.eup %1684 }
 0x1f3   :  { %v810_v58 = vmul.f32 %v1685_v16, %v2288_v55  ;;  %v1687_v49 = vpop.eup %1686 }
 0x1f4   :  { %v802_v51 = vmul.f32 %v1687_v49, %v2288_v55  ;;  %v1106_v55 = vmul.f32 %v2208_v25, %v2329_v59 }
 0x1f5   :  { %1199 = vrot.lane.b32.xlu1 %v784_v24, %s1724_s2  ;;  %993 = vrot.lane.b32.xlu0 %v786_v9, %s1725_s14  ;;  %v1345_v24 = vsub.f32 %v1688_v7, %v2476_v31 }
 0x1f7   :  { %v1361_v49 = vmul.f32 %v1345_v24, %v2468_v42 }
 0x1f9   :  { %1215 = vrot.lane.b32.xlu1 %v800_v39, %s1724_s2  ;;  %1009 = vrot.lane.b32.xlu0 %v802_v51, %s1725_s14 }
 0x1fd   :  { %919 = vrot.lane.b32.xlu1 %v881_v3, %s1725_s14  ;;  %1201 = vrot.lane.b32.xlu0 %v786_v9, %s1724_s2  ;;  %v1691_v3 = vld [vmem:[%s2836_s1 + $0x48] sm:$0xff] }
 0x201   :  { %935 = vrot.lane.b32.xlu1 %v889_v54, %s1725_s14  ;;  %1217 = vrot.lane.b32.xlu0 %v802_v51, %s1724_s2  ;;  %v1353_v51 = vsub.f32 %v1689_v10, %v2476_v31  ;;  %v1270_v54 = vsub.f32 %v1691_v3, %v2458_v30 }
 0x205   :  { %1145 = vrot.lane.b32.xlu1 %v1106_v55, %s1724_s2  ;;  %921 = vrot.lane.b32.xlu0 %v882_v52, %s1725_s14 }
 0x209   :  { %1161 = vrot.lane.b32.xlu1 %v1114_v32, %s1724_s2  ;;  %937 = vrot.lane.b32.xlu0 %v890_v33, %s1725_s14  ;;  %v1279_v32 = vmul.f32 %v2468_v42, %v1262_v27  ;;  %v1354_v27 = vsub.f32 %v1691_v3, %v2476_v31 }
 0x20b   :  { %v1370_v3 = vmul.f32 %v1354_v27, %v2468_v42 }
 0x20d   :  { %995 = vrot.lane.b32.xlu1 %v2298_v46, %s1725_s14  ;;  %997 = vrot.lane.b32.xlu0 %v2311_v47, %s1725_s14 }
 0x211   :  { %1011 = vrot.lane.b32.xlu1 %v2308_v15, %s1725_s14  ;;  %1013 = vrot.lane.b32.xlu0 %v2332_v57, %s1725_s14 }
 0x215   :  { %1203 = vrot.lane.b32.xlu1 %v2298_v46, %s1724_s2  ;;  %1205 = vrot.lane.b32.xlu0 %v2311_v47, %s1724_s2 }
 0x219   :  { %1219 = vrot.lane.b32.xlu1 %v2308_v15, %s1724_s2  ;;  %1221 = vrot.lane.b32.xlu0 %v2332_v57, %s1724_s2  ;;  %v2428_v29 = vpop.permute.xlu0 %1131  ;;  %v908_v41 = vpop.permute.xlu1 %907 }
 0x21a   :  { %v955_v17 = vsub.f32 %v2199_v40, %v908_v41  ;;  %v1179_v55 = vsub.f32 %v2199_v40, %v2428_v29  ;;  %v1287_v40 = vmul.f32 %v2468_v42, %v1270_v54  ;;  %v1346_v29 = vsub.f32 %v1690_v37, %v2476_v31 }
 0x21d   :  { %999 = vrot.lane.b32.xlu1 %v2360_v13, %s1725_s14  ;;  %1001 = vrot.lane.b32.xlu0 %v794_v44, %s1725_s14 }
 0x21f   :  { %v2433_v25 = vpop.permute.xlu0 %1147  ;;  %v924_v46 = vpop.permute.xlu1 %923 }
 0x220   :  { %v963_v18 = vsub.f32 %v2210_v26, %v924_v46 }
 0x221   :  { %1015 = vrot.lane.b32.xlu1 %v808_v22, %s1725_s14  ;;  %1017 = vrot.lane.b32.xlu0 %v810_v58, %s1725_s14 }
 0x223   :  { %v910_v15 = vpop.permute.xlu0 %909  ;;  %v2438_v47 = vpop.permute.xlu1 %1133 }
 0x224   :  { %v956_v52 = vsub.f32 %v2212_v4, %v910_v15  ;;  %v1187_v15 = vsub.f32 %v2210_v26, %v2433_v25  ;;  %v1362_v26 = vmul.f32 %v1346_v29, %v2468_v42  ;;  %v1180_v25 = vsub.f32 %v2212_v4, %v2438_v47  ;;  %v1693_v29 = vld [vmem:[%s2836_s1 + $0x50] sm:$0xff] }
 0x225   :  { %1207 = vrot.lane.b32.xlu1 %v2360_v13, %s1724_s2  ;;  %1209 = vrot.lane.b32.xlu0 %v794_v44, %s1724_s2  ;;  %v2480_v44 = vstv %s1259_s22  ;;  %v1355_v27 = vsub.f32 %v1693_v29, %v2476_v31 }
 0x227   :  { %v2442_v57 = vpop.permute.xlu0 %925  ;;  %v2444_v60 = vpop.permute.xlu1 %1149 }
 0x229   :  { %1223 = vrot.lane.b32.xlu1 %v808_v22, %s1724_s2  ;;  %1225 = vrot.lane.b32.xlu0 %v810_v58, %s1724_s2 }
 0x22b   :  { %v2446_v34 = vpop.permute.xlu0 %1135  ;;  %v2448_v63 = vpop.permute.xlu1 %911 }
 0x22f   :  { %v2450_v45 = vpop.permute.xlu0 %1151  ;;  %v2452_v61 = vpop.permute.xlu1 %927 }
 0x233   :  { %v2454_v62 = vpop.permute.xlu0 %913  ;;  %v2456_v6 = vpop.permute.xlu1 %1137 }
 0x237   :  { %v2464_v50 = vpop.permute.xlu0 %929  ;;  %v2466_v13 = vpop.permute.xlu1 %1153 }
 0x23b   :  { %v988_v20 = vpop.permute.xlu1 %987  ;;  %v2478_v22 = vpop.permute.xlu0 %1139 }
 0x23c   :  { %v1035_v23 = vmul.f32 %v988_v20, %v955_v17  ;;  %v1369_v17 = vmul.f32 %v1353_v51, %v2468_v42 }
 0x23e   :  { %v1294_v5 = vadd.f32 %v1278_v19, %v1035_v23  ;;  %v964_v19 = vsub.f32 %v2225_v36, %v2442_v57 }
 0x23f   :  { %v2489_v16 = vpop.permute.xlu0 %1155 }
 0x240   :  { %v1311_v58 = vmul.f32 %v2480_v44, %v1294_v5 }
 0x242   :  { %v1004_v39 = vpop.permute.xlu1 %1003  ;;  %1328 = vst.msk [vmem:[%s2839_s4] sm:$0xff] %vm1327_vm1, %v1311_v58 }
 0x243   :  { %v1043_v9 = vmul.f32 %v1004_v39, %v963_v18 }
 0x245   :  { %v1302_v53 = vadd.f32 %v1286_v1, %v1043_v9 }
 0x246   :  { %v1196_v33 = vpop.permute.xlu1 %1195 }
 0x247   :  { %v990_v41 = vpop.permute.xlu0 %989  ;;  %v1319_v46 = vmul.f32 %v2480_v44, %v1302_v53  ;;  %v1243_v7 = vmul.f32 %v1196_v33, %v1179_v55 }
 0x248   :  { %v1036_v8 = vmul.f32 %v990_v41, %v956_v52  ;;  %v1692_v41 = vld [vmem:[%s2836_s1 + $0x10] sm:$0xff] }
 0x249   :  { %1336 = vst.msk [vmem:[%s2839_s4 + $0x40] sm:$0xff] %vm1327_vm1, %v1319_v46  ;;  %v1377_v10 = vadd.f32 %v1361_v49, %v1243_v7  ;;  %v1188_v49 = vsub.f32 %v2225_v36, %v2444_v60  ;;  %v1263_v46 = vsub.f32 %v1692_v41, %v2458_v30 }
 0x24a   :  { %v1295_v28 = vadd.f32 %v1279_v32, %v1036_v8  ;;  %v1212_v20 = vpop.permute.xlu1 %1211 }
 0x24b   :  { %v1006_v23 = vpop.permute.xlu0 %1005  ;;  %v1393_v24 = vmul.f32 %v1377_v10, %v2480_v44  ;;  %v1251_v5 = vmul.f32 %v1212_v20, %v1187_v15  ;;  %v1271_v15 = vsub.f32 %v1693_v29, %v2458_v30  ;;  %v1347_v20 = vsub.f32 %v1692_v41, %v2476_v31 }
 0x24c   :  { %v1312_v18 = vmul.f32 %v2480_v44, %v1295_v28  ;;  %v1044_v1 = vmul.f32 %v1006_v23, %v964_v19  ;;  %v965_v23 = vsub.f32 %v2247_v21, %v2452_v61  ;;  %v1695_v61 = vld [vmem:[%s2836_s1 + $0x58] sm:$0xff] }
 0x24d   :  { %1410 = vst.msk [vmem:[%s2839_s4] sm:$0xff] %vm1409_vm2, %v1393_v24  ;;  %v1385_v57 = vadd.f32 %v1369_v17, %v1251_v5  ;;  %v957_v17 = vsub.f32 %v2235_v2, %v2448_v63  ;;  %v1288_v63 = vmul.f32 %v2468_v42, %v1271_v15 }
 0x24e   :  { %1329 = vst.msk [vmem:[%s2839_s4 + $0x8] sm:$0xff] %vm1327_vm1, %v1312_v18  ;;  %v1303_v37 = vadd.f32 %v1287_v40, %v1044_v1  ;;  %v2532_v39 = vpop.permute.xlu1 %915  ;;  %v1280_v40 = vmul.f32 %v2468_v42, %v1263_v46  ;;  %v1694_v18 = vld [vmem:[%s2836_s1 + $0x18] sm:$0xff] }
 0x24f   :  { %v1198_v58 = vpop.permute.xlu0 %1197  ;;  %v1401_v9 = vmul.f32 %v1385_v57, %v2480_v44  ;;  %v1264_v5 = vsub.f32 %v1694_v18, %v2458_v30 }
 0x250   :  { %v1320_v4 = vmul.f32 %v2480_v44, %v1303_v37  ;;  %v1244_v47 = vmul.f32 %v1198_v58, %v1180_v25  ;;  %v1363_v37 = vmul.f32 %v1347_v20, %v2468_v42  ;;  %v1272_v58 = vsub.f32 %v1695_v61, %v2458_v30 }
 0x251   :  { %1418 = vst.msk [vmem:[%s2839_s4 + $0x40] sm:$0xff] %vm1409_vm2, %v1401_v9  ;;  %v1181_v9 = vsub.f32 %v2235_v2, %v2446_v34  ;;  %v1348_v34 = vsub.f32 %v1694_v18, %v2476_v31 }
 0x252   :  { %1337 = vst.msk [vmem:[%s2839_s4 + $0x48] sm:$0xff] %vm1327_vm1, %v1320_v4  ;;  %v1378_v51 = vadd.f32 %v1362_v26, %v1244_v47  ;;  %v2547_v54 = vpop.permute.xlu1 %931  ;;  %v958_v4 = vsub.f32 %v2260_v38, %v2454_v62  ;;  %v1289_v2 = vmul.f32 %v2468_v42, %v1272_v58  ;;  %v1189_v62 = vsub.f32 %v2247_v21, %v2450_v45 }
 0x253   :  { %v1214_v55 = vpop.permute.xlu0 %1213  ;;  %v1364_v21 = vmul.f32 %v1348_v34, %v2468_v42  ;;  %v1182_v45 = vsub.f32 %v2260_v38, %v2456_v6  ;;  %v959_v34 = vsub.f32 %v2251_v14, %v2532_v39  ;;  %v967_v39 = vsub.f32 %v2264_v0, %v2547_v54 }
 0x254   :  { %v1394_v52 = vmul.f32 %v1378_v51, %v2480_v44  ;;  %v1252_v53 = vmul.f32 %v1214_v55, %v1188_v49  ;;  %v1281_v49 = vmul.f32 %v2468_v42, %v1264_v5  ;;  %v1190_v5 = vsub.f32 %v2278_v12, %v2466_v13 }
 0x256   :  { %1411 = vst.msk [vmem:[%s2839_s4 + $0x8] sm:$0xff] %vm1409_vm2, %v1394_v52  ;;  %v1386_v36 = vadd.f32 %v1370_v3, %v1252_v53  ;;  %v2554_v60 = vpop.permute.xlu1 %1141 }
 0x257   :  { %v2556_v32 = vpop.permute.xlu0 %917 }
 0x258   :  { %v1402_v33 = vmul.f32 %v1386_v36, %v2480_v44  ;;  %v1371_v36 = vmul.f32 %v1355_v27, %v2468_v42 }
 0x25a   :  { %1419 = vst.msk [vmem:[%s2839_s4 + $0x48] sm:$0xff] %vm1409_vm2, %v1402_v33  ;;  %v2567_v7 = vpop.permute.xlu1 %1157  ;;  %v966_v33 = vsub.f32 %v2278_v12, %v2464_v50 }
 0x25b   :  { %v2569_v8 = vpop.permute.xlu0 %933 }
 0x25f   :  { %v992_v19 = vpop.permute.xlu1 %991  ;;  %v2578_v10 = vpop.permute.xlu0 %1143 }
 0x260   :  { %v1037_v28 = vmul.f32 %v992_v19, %v957_v17 }
 0x262   :  { %v1296_v24 = vadd.f32 %v1280_v40, %v1037_v28 }
 0x263   :  { %v1008_v1 = vpop.permute.xlu1 %1007  ;;  %v2588_v26 = vpop.permute.xlu0 %1159 }
 0x264   :  { %v1313_v25 = vmul.f32 %v2480_v44, %v1296_v24  ;;  %v1045_v57 = vmul.f32 %v1008_v1, %v965_v23  ;;  %v1356_v23 = vsub.f32 %v1695_v61, %v2476_v31 }
 0x266   :  { %1330 = vst.msk [vmem:[%s2839_s4 + $0x10] sm:$0xff] %vm1327_vm1, %v1313_v25  ;;  %v1304_v47 = vadd.f32 %v1288_v63, %v1045_v57  ;;  %v1372_v25 = vmul.f32 %v1356_v23, %v2468_v42 }
 0x267   :  { %v1200_v51 = vpop.permute.xlu1 %1199  ;;  %v994_v3 = vpop.permute.xlu0 %993 }
 0x268   :  { %v1321_v55 = vmul.f32 %v2480_v44, %v1304_v47  ;;  %v1245_v52 = vmul.f32 %v1200_v51, %v1181_v9  ;;  %v1038_v53 = vmul.f32 %v994_v3, %v958_v4  ;;  %v1696_v4 = vld [vmem:[%s2836_s1 + $0x20] sm:$0xff] }
 0x269   :  { %v1265_v47 = vsub.f32 %v1696_v4, %v2458_v30 }
 0x26a   :  { %1338 = vst.msk [vmem:[%s2839_s4 + $0x50] sm:$0xff] %vm1327_vm1, %v1321_v55  ;;  %v1379_v41 = vadd.f32 %v1363_v37, %v1245_v52  ;;  %v1297_v46 = vadd.f32 %v1281_v49, %v1038_v53  ;;  %v1697_v49 = vld [vmem:[%s2836_s1 + $0x28] sm:$0xff]  ;;  %v1698_v52 = vld [vmem:[%s2836_s1 + $0x60] sm:$0xff] }
 0x26b   :  { %v1216_v17 = vpop.permute.xlu1 %1215  ;;  %v1010_v40 = vpop.permute.xlu0 %1009  ;;  %v1266_v51 = vsub.f32 %v1697_v49, %v2458_v30  ;;  %v1273_v53 = vsub.f32 %v1698_v52, %v2458_v30 }
 0x26c   :  { %v1395_v29 = vmul.f32 %v1379_v41, %v2480_v44  ;;  %v1314_v15 = vmul.f32 %v2480_v44, %v1297_v46  ;;  %v1253_v19 = vmul.f32 %v1216_v17, %v1189_v62  ;;  %v1046_v28 = vmul.f32 %v1010_v40, %v966_v33 }
 0x26d   :  { %v960_v62 = vsub.f32 %v2266_v43, %v2556_v32  ;;  %v1282_v33 = vmul.f32 %v2468_v42, %v1265_v47  ;;  %v1283_v41 = vmul.f32 %v2468_v42, %v1266_v51  ;;  %v968_v32 = vsub.f32 %v2295_v35, %v2569_v8 }
 0x26e   :  { %1412 = vst.msk [vmem:[%s2839_s4 + $0x10] sm:$0xff] %vm1409_vm2, %v1395_v29  ;;  %v1387_v50 = vadd.f32 %v1371_v36, %v1253_v19  ;;  %v1305_v20 = vadd.f32 %v1289_v2, %v1046_v28  ;;  %v1699_v36 = vld [vmem:[%s2836_s1 + $0x68] sm:$0xff]  ;;  %v1349_v28 = vsub.f32 %v1696_v4, %v2476_v31  ;;  %v1183_v8 = vsub.f32 %v2251_v14, %v2478_v22 }
 0x26f   :  { %1331 = vst.msk [vmem:[%s2839_s4 + $0x18] sm:$0xff] %vm1327_vm1, %v1314_v15  ;;  %v2632_v24 = vpop.permute.xlu1 %919  ;;  %v1202_v63 = vpop.permute.xlu0 %1201  ;;  %v1274_v2 = vsub.f32 %v1699_v36, %v2458_v30  ;;  %v1290_v15 = vmul.f32 %v2468_v42, %v1273_v53  ;;  %v1358_v54 = vsub.f32 %v1699_v36, %v2476_v31  ;;  %v1191_v36 = vsub.f32 %v2264_v0, %v2489_v16 }
 0x270   :  { %v1403_v18 = vmul.f32 %v1387_v50, %v2480_v44  ;;  %v1322_v38 = vmul.f32 %v2480_v44, %v1305_v20  ;;  %v1246_v6 = vmul.f32 %v1202_v63, %v1182_v45 }
 0x271   :  { %v1291_v19 = vmul.f32 %v2468_v42, %v1274_v2  ;;  %v1374_v47 = vmul.f32 %v1358_v54, %v2468_v42  ;;  %v1192_v2 = vsub.f32 %v2295_v35, %v2567_v7 }
 0x272   :  { %1420 = vst.msk [vmem:[%s2839_s4 + $0x50] sm:$0xff] %vm1409_vm2, %v1403_v18  ;;  %v1380_v1 = vadd.f32 %v1364_v21, %v1246_v6  ;;  %v1350_v21 = vsub.f32 %v1697_v49, %v2476_v31  ;;  %v1700_v49 = vld [vmem:[%s2836_s1 + $0x30] sm:$0xff] }
 0x273   :  { %1339 = vst.msk [vmem:[%s2839_s4 + $0x58] sm:$0xff] %vm1327_vm1, %v1322_v38  ;;  %v2647_v57 = vpop.permute.xlu1 %935  ;;  %v1218_v37 = vpop.permute.xlu0 %1217  ;;  %v1267_v51 = vsub.f32 %v1700_v49, %v2458_v30 }
 0x274   :  { %v1396_v27 = vmul.f32 %v1380_v1, %v2480_v44  ;;  %v1254_v61 = vmul.f32 %v1218_v37, %v1190_v5  ;;  %v1365_v5 = vmul.f32 %v1349_v28, %v2468_v42  ;;  %v1366_v1 = vmul.f32 %v1350_v21, %v2468_v42 }
 0x275   :  { %v1184_v37 = vsub.f32 %v2266_v43, %v2554_v60  ;;  %v1284_v7 = vmul.f32 %v2468_v42, %v1267_v51  ;;  %v961_v28 = vsub.f32 %v2320_v48, %v2632_v24 }
 0x276   :  { %1413 = vst.msk [vmem:[%s2839_s4 + $0x18] sm:$0xff] %vm1409_vm2, %v1396_v27  ;;  %v1388_v12 = vadd.f32 %v1372_v25, %v1254_v61  ;;  %v1357_v25 = vsub.f32 %v1698_v52, %v2476_v31  ;;  %v1701_v52 = vld [vmem:[%s2836_s1 + $0x38] sm:$0xff] }
 0x277   :  { %v2654_v13 = vpop.permute.xlu1 %1145  ;;  %v2656_v58 = vpop.permute.xlu0 %921  ;;  %v1268_v53 = vsub.f32 %v1701_v52, %v2458_v30 }
 0x278   :  { %v1404_v9 = vmul.f32 %v1388_v12, %v2480_v44  ;;  %v1373_v60 = vmul.f32 %v1357_v25, %v2468_v42  ;;  %v962_v21 = vsub.f32 %v2329_v59, %v2656_v58 }
 0x27a   :  { %1421 = vst.msk [vmem:[%s2839_s4 + $0x58] sm:$0xff] %vm1409_vm2, %v1404_v9 }
 0x27b   :  { %v2671_v3 = vpop.permute.xlu1 %1161  ;;  %v2673_v55 = vpop.permute.xlu0 %937 }
 0x27f   :  { %v996_v46 = vpop.permute.xlu1 %995  ;;  %v998_v17 = vpop.permute.xlu0 %997 }
 0x280   :  { %v1039_v40 = vmul.f32 %v996_v46, %v959_v34  ;;  %v1040_v29 = vmul.f32 %v998_v17, %v960_v62  ;;  %v1285_v17 = vmul.f32 %v2468_v42, %v1268_v53  ;;  %v1194_v53 = vsub.f32 %v2357_v11, %v2671_v3 }
 0x282   :  { %v1298_v45 = vadd.f32 %v1282_v33, %v1039_v40  ;;  %v1299_v50 = vadd.f32 %v1283_v41, %v1040_v29  ;;  %v1702_v40 = vld [vmem:[%s2836_s1 + $0x70] sm:$0xff] }
 0x283   :  { %v1012_v20 = vpop.permute.xlu1 %1011  ;;  %v1014_v23 = vpop.permute.xlu0 %1013  ;;  %v1275_v29 = vsub.f32 %v1702_v40, %v2458_v30 }
 0x284   :  { %v1315_v63 = vmul.f32 %v2480_v44, %v1298_v45  ;;  %v1316_v18 = vmul.f32 %v2480_v44, %v1299_v50  ;;  %v1047_v38 = vmul.f32 %v1012_v20, %v967_v39  ;;  %v1048_v6 = vmul.f32 %v1014_v23, %v968_v32 }
 0x285   :  { %v1292_v23 = vmul.f32 %v2468_v42, %v1275_v29 }
 0x286   :  { %1332 = vst.msk [vmem:[%s2839_s4 + $0x20] sm:$0xff] %vm1327_vm1, %v1315_v63  ;;  %1333 = vst.msk [vmem:[%s2839_s4 + $0x28] sm:$0xff] %vm1327_vm1, %v1316_v18  ;;  %v1306_v27 = vadd.f32 %v1290_v15, %v1047_v38  ;;  %v1307_v61 = vadd.f32 %v1291_v19, %v1048_v6  ;;  %v1703_v15 = vld [vmem:[%s2836_s1 + $0x78] sm:$0xff]  ;;  %v1351_v18 = vsub.f32 %v1700_v49, %v2476_v31 }
 0x287   :  { %v1204_v12 = vpop.permute.xlu1 %1203  ;;  %v1206_v9 = vpop.permute.xlu0 %1205  ;;  %v1276_v19 = vsub.f32 %v1703_v15, %v2458_v30  ;;  %v1352_v38 = vsub.f32 %v1701_v52, %v2476_v31  ;;  %v969_v6 = vsub.f32 %v2327_v56, %v2647_v57  ;;  %v1193_v52 = vsub.f32 %v2327_v56, %v2588_v26 }
 0x288   :  { %v1323_v4 = vmul.f32 %v2480_v44, %v1306_v27  ;;  %v1324_v14 = vmul.f32 %v2480_v44, %v1307_v61  ;;  %v1247_v22 = vmul.f32 %v1204_v12, %v1183_v8  ;;  %v1248_v43 = vmul.f32 %v1206_v9, %v1184_v37 }
 0x289   :  { %v1293_v63 = vmul.f32 %v2468_v42, %v1276_v19  ;;  %v1367_v61 = vmul.f32 %v1351_v18, %v2468_v42  ;;  %v1368_v12 = vmul.f32 %v1352_v38, %v2468_v42  ;;  %v1359_v9 = vsub.f32 %v1702_v40, %v2476_v31 }
 0x28a   :  { %1340 = vst.msk [vmem:[%s2839_s4 + $0x60] sm:$0xff] %vm1327_vm1, %v1323_v4  ;;  %1341 = vst.msk [vmem:[%s2839_s4 + $0x68] sm:$0xff] %vm1327_vm1, %v1324_v14  ;;  %v1381_v34 = vadd.f32 %v1365_v5, %v1247_v22  ;;  %v1382_v62 = vadd.f32 %v1366_v1, %v1248_v43  ;;  %v970_v5 = vsub.f32 %v2357_v11, %v2673_v55 }
 0x28b   :  { %v1220_v33 = vpop.permute.xlu1 %1219  ;;  %v1222_v41 = vpop.permute.xlu0 %1221  ;;  %v1360_v4 = vsub.f32 %v1703_v15, %v2476_v31  ;;  %v1185_v14 = vsub.f32 %v2320_v48, %v2578_v10  ;;  %v1186_v22 = vsub.f32 %v2329_v59, %v2654_v13  ;;  %v1375_v13 = vmul.f32 %v1359_v9, %v2468_v42 }
 0x28c   :  { %v1397_v46 = vmul.f32 %v1381_v34, %v2480_v44  ;;  %v1398_v0 = vmul.f32 %v1382_v62, %v2480_v44  ;;  %v1255_v16 = vmul.f32 %v1220_v33, %v1191_v36  ;;  %v1256_v35 = vmul.f32 %v1222_v41, %v1192_v2 }
 0x28d   :  { %v1376_v51 = vmul.f32 %v1360_v4, %v2468_v42 }
 0x28e   :  { %1414 = vst.msk [vmem:[%s2839_s4 + $0x20] sm:$0xff] %vm1409_vm2, %v1397_v46  ;;  %1415 = vst.msk [vmem:[%s2839_s4 + $0x28] sm:$0xff] %vm1409_vm2, %v1398_v0  ;;  %v1389_v39 = vadd.f32 %v1373_v60, %v1255_v16  ;;  %v1390_v32 = vadd.f32 %v1374_v47, %v1256_v35 }
 0x28f   :  { %v1000_v45 = vpop.permute.xlu1 %999  ;;  %v1002_v30 = vpop.permute.xlu0 %1001 }
 0x290   :  { %v1405_v50 = vmul.f32 %v1389_v39, %v2480_v44  ;;  %v1406_v24 = vmul.f32 %v1390_v32, %v2480_v44  ;;  %v1041_v20 = vmul.f32 %v1000_v45, %v961_v28  ;;  %v1042_v58 = vmul.f32 %v1002_v30, %v962_v21 }
 0x292   :  { %1422 = vst.msk [vmem:[%s2839_s4 + $0x60] sm:$0xff] %vm1409_vm2, %v1405_v50  ;;  %1423 = vst.msk [vmem:[%s2839_s4 + $0x68] sm:$0xff] %vm1409_vm2, %v1406_v24  ;;  %v1300_v1 = vadd.f32 %v1284_v7, %v1041_v20  ;;  %v1301_v25 = vadd.f32 %v1285_v17, %v1042_v58 }
 0x293   :  { %v1016_v54 = vpop.permute.xlu1 %1015  ;;  %v1018_v8 = vpop.permute.xlu0 %1017 }
 0x294   :  { %v1317_v37 = vmul.f32 %v2480_v44, %v1300_v1  ;;  %v1318_v57 = vmul.f32 %v2480_v44, %v1301_v25  ;;  %v1049_v27 = vmul.f32 %v1016_v54, %v969_v6  ;;  %v1050_v55 = vmul.f32 %v1018_v8, %v970_v5 }
 0x296   :  { %1334 = vst.msk [vmem:[%s2839_s4 + $0x30] sm:$0xff] %vm1327_vm1, %v1317_v37  ;;  %1335 = vst.msk [vmem:[%s2839_s4 + $0x38] sm:$0xff] %vm1327_vm1, %v1318_v57  ;;  %v1308_v43 = vadd.f32 %v1292_v23, %v1049_v27  ;;  %v1309_v60 = vadd.f32 %v1293_v63, %v1050_v55 }
 0x297   :  { %v1208_v47 = vpop.permute.xlu1 %1207  ;;  %v1210_v31 = vpop.permute.xlu0 %1209 }
 0x298   :  { %v1325_v49 = vmul.f32 %v2480_v44, %v1308_v43  ;;  %v1326_v48 = vmul.f32 %v2480_v44, %v1309_v60  ;;  %v1249_v10 = vmul.f32 %v1208_v47, %v1185_v14  ;;  %v1250_v59 = vmul.f32 %v1210_v31, %v1186_v22 }
 0x29a   :  { %1342 = vst.msk [vmem:[%s2839_s4 + $0x70] sm:$0xff] %vm1327_vm1, %v1325_v49  ;;  %1343 = vst.msk [vmem:[%s2839_s4 + $0x78] sm:$0xff] %vm1327_vm1, %v1326_v48  ;;  %v1383_v36 = vadd.f32 %v1367_v61, %v1249_v10  ;;  %v1384_v2 = vadd.f32 %v1368_v12, %v1250_v59 }
 0x29b   :  { %v1224_v34 = vpop.permute.xlu1 %1223  ;;  %v1226_v42 = vpop.permute.xlu0 %1225 }
 0x29c   :  { %v1399_v62 = vmul.f32 %v1383_v36, %v2480_v44  ;;  %v1400_v56 = vmul.f32 %v1384_v2, %v2480_v44  ;;  %v1257_v26 = vmul.f32 %v1224_v34, %v1193_v52  ;;  %v1258_v11 = vmul.f32 %v1226_v42, %v1194_v53 }
 0x29e   :  { %1416 = vst.msk [vmem:[%s2839_s4 + $0x30] sm:$0xff] %vm1409_vm2, %v1399_v62  ;;  %1417 = vst.msk [vmem:[%s2839_s4 + $0x38] sm:$0xff] %vm1409_vm2, %v1400_v56  ;;  %v1391_v3 = vadd.f32 %v1375_v13, %v1257_v26  ;;  %v1392_v33 = vadd.f32 %v1376_v51, %v1258_v11 }
 0x2a0   :  { %v1407_v41 = vmul.f32 %v1391_v3, %v2480_v44  ;;  %v1408_v46 = vmul.f32 %v1392_v33, %v2480_v44 }
 0x2a2   :  { %1424 = vst.msk [vmem:[%s2839_s4 + $0x70] sm:$0xff] %vm1409_vm2, %v1407_v41  ;;  %1425 = vst.msk [vmem:[%s2839_s4 + $0x78] sm:$0xff] %vm1409_vm2, %v1408_v46 }
 0x2a3   :  { %1430 = vsyncpa [#allocation4], 1 }

</bundles_post_ra>
